<compile_context>
chip_gen: v5e
topology: v5e:2x2
jax: 0.10.0
libtpu: 0.0.40
codegen_flags: <defaults>
</compile_context>

<pallas_src>
import jax
import jax.numpy as jnp
from jax.experimental import pallas as pl
from jax.experimental.pallas import tpu as pltpu

FEATURE_DIM = 32          # config.FEATURE_DIM is not available in-script.
BN_EPS = 1e-5
CONV_COUTS = (4, 8, 16)   # module architecture
MAX_TILE_N = 512          # lane-tile for the conv row axis (multiple of 128)
MAX_TILE_B = 256          # sublane-tile for the FC batch axis (multiple of 8)


def _round_up(x, m):
    return (x + m - 1) // m * m


# ----------------------------------------------------------------------------
# Pallas kernels
# ----------------------------------------------------------------------------
def conv_block_kernel(cols_ref, w_ref, p_ref, o_ref):
    """3x3 'same' Conv -> bias -> ReLU -> BatchNorm2d(eval, folded) -> MaxPool(2,2).

    cols_ref : (4, Kp, TN) bf16  im2col taps; axis 0 = position in the 2x2 pool
                                 window, Kp = padded 9*Cin, TN = lane tile of
                                 N = B*Ho*Wo (pooled output pixels).
    w_ref    : (Cp, Kp)    bf16  folded conv weight (Cout padded to mult. of 8).
    p_ref    : (3, Cp, 1)  f32   packed per-channel [bias, bn_scale, bn_shift].
    o_ref    : (Cp, TN)    bf16  pooled block output (lane-dense store).
    """
    w = w_ref[...]
    cp, tn = o_ref.shape
    # Hoist the per-channel parameter broadcasts out of the 4-position loop
    # (JAX does not CSE broadcast_in_dim inside the unrolled loop).
    bias = jnp.broadcast_to(p_ref[0], (cp, tn))
    scale = jnp.broadcast_to(p_ref[1], (cp, tn))
    shift = jnp.broadcast_to(p_ref[2], (cp, tn))

    pooled = None
    for pos in range(4):  # static unroll over the 4 pool-window positions
        y = jnp.dot(w, cols_ref[pos], preferred_element_type=jnp.float32)
        y = jnp.maximum(y + bias, 0.0) * scale + shift   # ReLU + folded BN (f32)
        # BN applied per position, THEN max -> correct even for negative gamma.
        pooled = y if pooled is None else jnp.maximum(pooled, y)
    o_ref[...] = pooled.astype(o_ref.dtype)


def fc_kernel(x_ref, w1_ref, p1_ref, w2_ref, p2_ref, wl_ref, bl_ref, o_ref):
    """[Linear -> ReLU -> BatchNorm1d(eval, folded)] x2 -> Linear (logits).

    x_ref : (TB, 144) bf16 ; w* bf16 ; p* = (3, 1, D) f32 packed [bias, scale, shift].
    """
    h = jnp.dot(x_ref[...], w1_ref[...], preferred_element_type=jnp.float32)
    h = jnp.maximum(h + p1_ref[0], 0.0) * p1_ref[1] + p1_ref[2]
    h = jnp.dot(h.astype(w2_ref.dtype), w2_ref[...], preferred_element_type=jnp.float32)
    h = jnp.maximum(h + p2_ref[0], 0.0) * p2_ref[1] + p2_ref[2]
    o_ref[...] = jnp.dot(h.astype(wl_ref.dtype), wl_ref[...],
                         preferred_element_type=jnp.float32) + bl_ref[...]


# ----------------------------------------------------------------------------
# Plain-JAX glue: im2col for 3x3 'same' conv + 2x2/stride-2 pool window taps
# ----------------------------------------------------------------------------
def _im2col_pool(x):
    """x: (C, B, H, W) -> cols (4, 9*C, B*Ho*Wo) with
    cols[(py,px), (dy,dx,c), (b,i,j)] = xpad[c, b, 2i+py+dy, 2j+px+dx]."""
    C, B, H, W = x.shape
    xp = jnp.pad(x, ((0, 0), (0, 0), (1, 1), (1, 1)))
    taps = [xp[:, :, dy:dy + H, dx:dx + W] for dy in range(3) for dx in range(3)]
    cols = jnp.stack(taps, axis=0)                          # (9, C, B, H, W)
    Ho, Wo = H // 2, W // 2                                 # floor mode (torch default)
    cols = cols[:, :, :, :2 * Ho, :2 * Wo].reshape(9, C, B, Ho, 2, Wo, 2)
    cols = jnp.transpose(cols, (4, 6, 0, 1, 2, 3, 5))       # (py, px, t, C, B, Ho, Wo)
    return cols.reshape(4, 9 * C, B * Ho * Wo), (B, Ho, Wo)


# ----------------------------------------------------------------------------
# pallas_call wrappers
# ----------------------------------------------------------------------------
def conv_block(x, w, p, cout):
    """x: (Cin, B, H, W);  w: (Cp, Kp) bf16;  p: (3, Cp, 1) f32;  cout = true Cout."""
    cols, (B, Ho, Wo) = _im2col_pool(x)                     # (4, 9*Cin, N)
    k = cols.shape[1]
    n = B * Ho * Wo
    cpad, kpad = w.shape
    tile = min(MAX_TILE_N, _round_up(n, 128))
    npad = _round_up(n, tile)
    cols = jnp.pad(cols, ((0, 0), (0, kpad - k), (0, npad - n))).astype(jnp.bfloat16)

    out = pl.pallas_call(
        conv_block_kernel,
        out_shape=jax.ShapeDtypeStruct((cpad, npad), jnp.bfloat16),
        grid=(npad // tile,),
        in_specs=[
            pl.BlockSpec((4, kpad, tile), lambda i: (0, 0, i)),   # tiled over N
            pl.BlockSpec((cpad, kpad), lambda i: (0, 0)),         # resident weight
            pl.BlockSpec((3, cpad, 1), lambda i: (0, 0, 0)),      # resident params
        ],
        out_specs=pl.BlockSpec((cpad, tile), lambda i: (0, i)),
        compiler_params=pltpu.CompilerParams(dimension_semantics=("parallel",)),
    )(cols, w, p)
    return out[:cout, :n].reshape(cout, B, Ho, Wo)


def fc_forward(x_fc, fcp):
    """x_fc: (B, 144) channel-major-flattened features (bf16 or f32)."""
    B, din = x_fc.shape
    tile_b = min(MAX_TILE_B, _round_up(B, 8))
    bpad = _round_up(B, tile_b)
    x_fc = jnp.pad(x_fc, ((0, bpad - B), (0, 0))).astype(jnp.bfloat16)
    dl = fcp["wl"].shape[1]

    logits = pl.pallas_call(
        fc_kernel,
        out_shape=jax.ShapeDtypeStruct((bpad, dl), jnp.float32),
        grid=(bpad // tile_b,),
        in_specs=[
            pl.BlockSpec((tile_b, din), lambda i: (i, 0)),
            pl.BlockSpec(fcp["w1"].shape, lambda i: (0, 0)),
            pl.BlockSpec(fcp["p1"].shape, lambda i: (0, 0, 0)),
            pl.BlockSpec(fcp["w2"].shape, lambda i: (0, 0)),
            pl.BlockSpec(fcp["p2"].shape, lambda i: (0, 0, 0)),
            pl.BlockSpec(fcp["wl"].shape, lambda i: (0, 0)),
            pl.BlockSpec(fcp["bl"].shape, lambda i: (0, 0)),
        ],
        out_specs=pl.BlockSpec((tile_b, dl), lambda i: (i, 0)),
        compiler_params=pltpu.CompilerParams(dimension_semantics=("parallel",)),
    )(x_fc, fcp["w1"], fcp["p1"], fcp["w2"], fcp["p2"], fcp["wl"], fcp["bl"])
    return logits[:B]


def mnist_cnn_forward(x_nchw, params):
    # NCHW -> (C, B, H, W): channels lead, so conv blocks are transpose-free and
    # the final flatten is channel-major, matching torch.flatten(x, 1).
    x = jnp.transpose(x_nchw, (1, 0, 2, 3)).astype(jnp.float32)
    for cp, cout in zip(params["conv"], CONV_COUTS):
        x = conv_block(x, cp["w"], cp["p"], cout)            # 28 -> 14 -> 7 -> 3 spatial
    C, B, Ho, Wo = x.shape                                   # (16, B, 3, 3)
    x_fc = jnp.transpose(x, (1, 0, 2, 3)).reshape(B, C * Ho * Wo)   # (B, 144)
    return fc_forward(x_fc, params["fc"])


# ----------------------------------------------------------------------------
# Parameters: PyTorch-layout init  +  host-side fold/pack into kernel layout
# ----------------------------------------------------------------------------
def init_params(key):
    """Synthetic parameters in the PyTorch module's native layouts."""
    keys = iter(jax.random.split(key, 64))

    def nrm(shape, scale=0.1):
        return scale * jax.random.normal(next(keys), shape, jnp.float32)

    conv = []
    cin = 1
    for cout in CONV_COUTS:
        conv.append(dict(
            w=nrm((cout, cin, 3, 3)),        # Conv2d(cin, cout, 3, padding='same')
            b=nrm((cout,)),
            gamma=1.0 + nrm((cout,)),        # BatchNorm2d params / running stats
            beta=nrm((cout,)),
            mean=nrm((cout,)),
            var=1.0 + jnp.abs(nrm((cout,))),
        ))
        cin = cout

    def lin(dout, din):                      # torch Linear: weight (out, in)
        return nrm((dout, din)), nrm((dout,))

    fc = {}
    fc["w1"], fc["b1"] = lin(120, 9 * 16)
    fc["g1"], fc["be1"] = 1.0 + nrm((120,)), nrm((120,))
    fc["m1"], fc["v1"] = nrm((120,)), 1.0 + jnp.abs(nrm((120,)))
    fc["w2"], fc["b2"] = lin(FEATURE_DIM, 120)
    fc["g2"], fc["be2"] = 1.0 + nrm((FEATURE_DIM,)), nrm((FEATURE_DIM,))
    fc["m2"], fc["v2"] = nrm((FEATURE_DIM,)), 1.0 + jnp.abs(nrm((FEATURE_DIM,)))
    fc["wl"], fc["bl"] = lin(10, FEATURE_DIM)
    return {"conv": conv, "fc": fc}


def fold_params(params):
    """Fold BN into scale/shift, pack per-channel vectors, cast matmul weights to bf16."""
    folded_conv = []
    for cp in params["conv"]:
        cout, cin = cp["w"].shape[0], cp["w"].shape[1]
        k = 9 * cin
        cpad, kpad = _round_up(cout, 8), _round_up(k, 8)
        # (Cout, Cin, 3, 3) -> (Cout, (dy, dx, cin)) to match the im2col K order.
        w2d = jnp.transpose(cp["w"], (0, 2, 3, 1)).reshape(cout, k)
        w2d = jnp.pad(w2d, ((0, cpad - cout), (0, kpad - k))).astype(jnp.bfloat16)
        scale = cp["gamma"] * jax.lax.rsqrt(cp["var"] + BN_EPS)
        shift = cp["beta"] - cp["mean"] * scale
        pk = jnp.stack([cp["b"], scale, shift], axis=0)          # (3, Cout)
        pk = jnp.pad(pk, ((0, 0), (0, cpad - cout)))[:, :, None]  # (3, Cpad, 1); pads -> 0
        folded_conv.append(dict(w=w2d, p=pk.astype(jnp.float32)))

    fc = params["fc"]

    def fold_lin_bn(w, b, g, be, m, v):
        scale = g * jax.lax.rsqrt(v + BN_EPS)
        shift = be - m * scale
        wk = jnp.transpose(w).astype(jnp.bfloat16)               # (din, dout)
        pk = jnp.stack([b, scale, shift], axis=0)[:, None, :].astype(jnp.float32)
        return wk, pk                                            # (3, 1, dout)

    w1, p1 = fold_lin_bn(fc["w1"], fc["b1"], fc["g1"], fc["be1"], fc["m1"], fc["v1"])
    w2, p2 = fold_lin_bn(fc["w2"], fc["b2"], fc["g2"], fc["be2"], fc["m2"], fc["v2"])
    wl = jnp.transpose(fc["wl"]).astype(jnp.bfloat16)            # (FEATURE_DIM, 10)
    bl = fc["bl"][None, :].astype(jnp.float32)                   # (1, 10)
    return {"conv": folded_conv,
            "fc": dict(w1=w1, p1=p1, w2=w2, p2=p2, wl=wl, bl=bl)}


if __name__ == "__main__":
    key = jax.random.PRNGKey(0)
    kx, kp = jax.random.split(key)
    # The module's 9*16 flatten dim implies 28x28 MNIST inputs; batch=2.
    x = jax.random.normal(kx, (2, 1, 28, 28), jnp.float32)
    params = fold_params(init_params(kp))

    fwd = jax.jit(mnist_cnn_forward)
    out = jax.block_until_ready(fwd(x, params))
    assert out.shape == (2, 10) and out.dtype == jnp.float32
    print("KERNEL_OK")
</pallas_src>

<mosaic_0001>
module attributes {stable_mosaic.version = 11 : i64} {
  func.func @conv_block_kernel(%arg0: i32, %arg1: memref<4x16x512xbf16, #tpu.memory_space<vmem>>, %arg2: memref<8x16xbf16, #tpu.memory_space<vmem>>, %arg3: memref<3x8x1xf32, #tpu.memory_space<vmem>>, %arg4: memref<8x512xbf16, #tpu.memory_space<vmem>>) attributes {dimension_semantics = [#tpu.dimension_semantics<parallel>], iteration_bounds = array<i64: 1>, scalar_prefetch = 0 : i64, scratch_operands = 0 : i64, tpu.core_type = #tpu.core_type<tc>, window_params = [{transform_indices = @transform_0, window_bounds = array<i64: 4, 16, 512>}, {pipeline_mode = #tpu.pipeline_mode<synchronous>, transform_indices = @transform_1, window_bounds = array<i64: 8, 16>}, {pipeline_mode = #tpu.pipeline_mode<synchronous>, transform_indices = @transform_2, window_bounds = array<i64: 3, 8, 1>}, {transform_indices = @transform_3, window_bounds = array<i64: 8, 512>}]} {
    %c0 = arith.constant 0 : index
    %c0_0 = arith.constant 0 : index
    %0 = vector.load %arg2[%c0, %c0_0] : memref<8x16xbf16, #tpu.memory_space<vmem>>, vector<8x16xbf16>
    %c0_1 = arith.constant 0 : index
    %c0_2 = arith.constant 0 : index
    %c0_3 = arith.constant 0 : index
    %1 = vector.load %arg3[%c0_1, %c0_2, %c0_3] : memref<3x8x1xf32, #tpu.memory_space<vmem>>, vector<1x8x1xf32>
    %2 = vector.shape_cast %1 : vector<1x8x1xf32> to vector<8x1xf32>
    %3 = vector.shape_cast %2 : vector<8x1xf32> to vector<8x1xf32>
    %4 = vector.broadcast %3 : vector<8x1xf32> to vector<8x512xf32>
    %c1 = arith.constant 1 : index
    %c0_4 = arith.constant 0 : index
    %c0_5 = arith.constant 0 : index
    %5 = vector.load %arg3[%c1, %c0_4, %c0_5] : memref<3x8x1xf32, #tpu.memory_space<vmem>>, vector<1x8x1xf32>
    %6 = vector.shape_cast %5 : vector<1x8x1xf32> to vector<8x1xf32>
    %7 = vector.shape_cast %6 : vector<8x1xf32> to vector<8x1xf32>
    %8 = vector.broadcast %7 : vector<8x1xf32> to vector<8x512xf32>
    %c2 = arith.constant 2 : index
    %c0_6 = arith.constant 0 : index
    %c0_7 = arith.constant 0 : index
    %9 = vector.load %arg3[%c2, %c0_6, %c0_7] : memref<3x8x1xf32, #tpu.memory_space<vmem>>, vector<1x8x1xf32>
    %10 = vector.shape_cast %9 : vector<1x8x1xf32> to vector<8x1xf32>
    %11 = vector.shape_cast %10 : vector<8x1xf32> to vector<8x1xf32>
    %12 = vector.broadcast %11 : vector<8x1xf32> to vector<8x512xf32>
    %c0_8 = arith.constant 0 : index
    %c0_9 = arith.constant 0 : index
    %c0_10 = arith.constant 0 : index
    %13 = vector.load %arg1[%c0_8, %c0_9, %c0_10] : memref<4x16x512xbf16, #tpu.memory_space<vmem>>, vector<1x16x512xbf16>
    %14 = vector.shape_cast %13 : vector<1x16x512xbf16> to vector<16x512xbf16>
    %cst = arith.constant dense<0.000000e+00> : vector<8x512xf32>
    %15 = tpu.matmul %0, %14, %cst {dimension_numbers = #tpu.dot_dimension_numbers<[1], [0], [0], [1], [0, 0, 1, 1], [], []>} : vector<8x16xbf16>, vector<16x512xbf16>, vector<8x512xf32> -> vector<8x512xf32>
    %16 = arith.addf %15, %4 : vector<8x512xf32>
    %cst_11 = arith.constant 0.000000e+00 : f32
    %17 = vector.broadcast %cst_11 : f32 to vector<8x512xf32>
    %18 = arith.maximumf %16, %17 : vector<8x512xf32>
    %19 = arith.mulf %18, %8 : vector<8x512xf32>
    %20 = arith.addf %19, %12 : vector<8x512xf32>
    %c1_12 = arith.constant 1 : index
    %c0_13 = arith.constant 0 : index
    %c0_14 = arith.constant 0 : index
    %21 = vector.load %arg1[%c1_12, %c0_13, %c0_14] : memref<4x16x512xbf16, #tpu.memory_space<vmem>>, vector<1x16x512xbf16>
    %22 = vector.shape_cast %21 : vector<1x16x512xbf16> to vector<16x512xbf16>
    %cst_15 = arith.constant dense<0.000000e+00> : vector<8x512xf32>
    %23 = tpu.matmul %0, %22, %cst_15 {dimension_numbers = #tpu.dot_dimension_numbers<[1], [0], [0], [1], [0, 0, 1, 1], [], []>} : vector<8x16xbf16>, vector<16x512xbf16>, vector<8x512xf32> -> vector<8x512xf32>
    %24 = arith.addf %23, %4 : vector<8x512xf32>
    %cst_16 = arith.constant 0.000000e+00 : f32
    %25 = vector.broadcast %cst_16 : f32 to vector<8x512xf32>
    %26 = arith.maximumf %24, %25 : vector<8x512xf32>
    %27 = arith.mulf %26, %8 : vector<8x512xf32>
    %28 = arith.addf %27, %12 : vector<8x512xf32>
    %29 = arith.maximumf %20, %28 : vector<8x512xf32>
    %c2_17 = arith.constant 2 : index
    %c0_18 = arith.constant 0 : index
    %c0_19 = arith.constant 0 : index
    %30 = vector.load %arg1[%c2_17, %c0_18, %c0_19] : memref<4x16x512xbf16, #tpu.memory_space<vmem>>, vector<1x16x512xbf16>
    %31 = vector.shape_cast %30 : vector<1x16x512xbf16> to vector<16x512xbf16>
    %cst_20 = arith.constant dense<0.000000e+00> : vector<8x512xf32>
    %32 = tpu.matmul %0, %31, %cst_20 {dimension_numbers = #tpu.dot_dimension_numbers<[1], [0], [0], [1], [0, 0, 1, 1], [], []>} : vector<8x16xbf16>, vector<16x512xbf16>, vector<8x512xf32> -> vector<8x512xf32>
    %33 = arith.addf %32, %4 : vector<8x512xf32>
    %cst_21 = arith.constant 0.000000e+00 : f32
    %34 = vector.broadcast %cst_21 : f32 to vector<8x512xf32>
    %35 = arith.maximumf %33, %34 : vector<8x512xf32>
    %36 = arith.mulf %35, %8 : vector<8x512xf32>
    %37 = arith.addf %36, %12 : vector<8x512xf32>
    %38 = arith.maximumf %29, %37 : vector<8x512xf32>
    %c3 = arith.constant 3 : index
    %c0_22 = arith.constant 0 : index
    %c0_23 = arith.constant 0 : index
    %39 = vector.load %arg1[%c3, %c0_22, %c0_23] : memref<4x16x512xbf16, #tpu.memory_space<vmem>>, vector<1x16x512xbf16>
    %40 = vector.shape_cast %39 : vector<1x16x512xbf16> to vector<16x512xbf16>
    %cst_24 = arith.constant dense<0.000000e+00> : vector<8x512xf32>
    %41 = tpu.matmul %0, %40, %cst_24 {dimension_numbers = #tpu.dot_dimension_numbers<[1], [0], [0], [1], [0, 0, 1, 1], [], []>} : vector<8x16xbf16>, vector<16x512xbf16>, vector<8x512xf32> -> vector<8x512xf32>
    %42 = arith.addf %41, %4 : vector<8x512xf32>
    %cst_25 = arith.constant 0.000000e+00 : f32
    %43 = vector.broadcast %cst_25 : f32 to vector<8x512xf32>
    %44 = arith.maximumf %42, %43 : vector<8x512xf32>
    %45 = arith.mulf %44, %8 : vector<8x512xf32>
    %46 = arith.addf %45, %12 : vector<8x512xf32>
    %47 = arith.maximumf %38, %46 : vector<8x512xf32>
    %48 = arith.truncf %47 : vector<8x512xf32> to vector<8x512xbf16>
    %c0_26 = arith.constant 0 : index
    %c0_27 = arith.constant 0 : index
    %49 = vector.load %arg4[%c0_26, %c0_27] : memref<8x512xbf16, #tpu.memory_space<vmem>>, vector<8x512xbf16>
    tpu.vector_store %arg4[%c0_26, %c0_27], %48 {strides = array<i32>} : memref<8x512xbf16, #tpu.memory_space<vmem>>, vector<8x512xbf16>,
    return
  }
  func.func @transform_0(%arg0: i32) -> (i32, i32, i32) {
    %c0_i32 = arith.constant 0 : i32
    %c0_i32_0 = arith.constant 0 : i32
    %c0_i32_1 = arith.constant 0 : i32
    return %c0_i32, %c0_i32_0, %arg0 : i32, i32, i32
  }
  func.func @transform_1(%arg0: i32) -> (i32, i32) {
    %c0_i32 = arith.constant 0 : i32
    %c0_i32_0 = arith.constant 0 : i32
    %c0_i32_1 = arith.constant 0 : i32
    return %c0_i32, %c0_i32_0 : i32, i32
  }
  func.func @transform_2(%arg0: i32) -> (i32, i32, i32) {
    %c0_i32 = arith.constant 0 : i32
    %c0_i32_0 = arith.constant 0 : i32
    %c0_i32_1 = arith.constant 0 : i32
    %c0_i32_2 = arith.constant 0 : i32
    return %c0_i32, %c0_i32_0, %c0_i32_1 : i32, i32, i32
  }
  func.func @transform_3(%arg0: i32) -> (i32, i32) {
    %c0_i32 = arith.constant 0 : i32
    %c0_i32_0 = arith.constant 0 : i32
    return %c0_i32, %arg0 : i32, i32
  }
}

module attributes {stable_mosaic.version = 11 : i64} {
  func.func @conv_block_kernel(%arg0: i32, %arg1: memref<4x40x128xbf16, #tpu.memory_space<vmem>>, %arg2: memref<8x40xbf16, #tpu.memory_space<vmem>>, %arg3: memref<3x8x1xf32, #tpu.memory_space<vmem>>, %arg4: memref<8x128xbf16, #tpu.memory_space<vmem>>) attributes {dimension_semantics = [#tpu.dimension_semantics<parallel>], iteration_bounds = array<i64: 1>, scalar_prefetch = 0 : i64, scratch_operands = 0 : i64, tpu.core_type = #tpu.core_type<tc>, window_params = [{transform_indices = @transform_0, window_bounds = array<i64: 4, 40, 128>}, {pipeline_mode = #tpu.pipeline_mode<synchronous>, transform_indices = @transform_1, window_bounds = array<i64: 8, 40>}, {pipeline_mode = #tpu.pipeline_mode<synchronous>, transform_indices = @transform_2, window_bounds = array<i64: 3, 8, 1>}, {transform_indices = @transform_3, window_bounds = array<i64: 8, 128>}]} {
    %c0 = arith.constant 0 : index
    %c0_0 = arith.constant 0 : index
    %0 = vector.load %arg2[%c0, %c0_0] : memref<8x40xbf16, #tpu.memory_space<vmem>>, vector<8x40xbf16>
    %c0_1 = arith.constant 0 : index
    %c0_2 = arith.constant 0 : index
    %c0_3 = arith.constant 0 : index
    %1 = vector.load %arg3[%c0_1, %c0_2, %c0_3] : memref<3x8x1xf32, #tpu.memory_space<vmem>>, vector<1x8x1xf32>
    %2 = vector.shape_cast %1 : vector<1x8x1xf32> to vector<8x1xf32>
    %3 = vector.shape_cast %2 : vector<8x1xf32> to vector<8x1xf32>
    %4 = vector.broadcast %3 : vector<8x1xf32> to vector<8x128xf32>
    %c1 = arith.constant 1 : index
    %c0_4 = arith.constant 0 : index
    %c0_5 = arith.constant 0 : index
    %5 = vector.load %arg3[%c1, %c0_4, %c0_5] : memref<3x8x1xf32, #tpu.memory_space<vmem>>, vector<1x8x1xf32>
    %6 = vector.shape_cast %5 : vector<1x8x1xf32> to vector<8x1xf32>
    %7 = vector.shape_cast %6 : vector<8x1xf32> to vector<8x1xf32>
    %8 = vector.broadcast %7 : vector<8x1xf32> to vector<8x128xf32>
    %c2 = arith.constant 2 : index
    %c0_6 = arith.constant 0 : index
    %c0_7 = arith.constant 0 : index
    %9 = vector.load %arg3[%c2, %c0_6, %c0_7] : memref<3x8x1xf32, #tpu.memory_space<vmem>>, vector<1x8x1xf32>
    %10 = vector.shape_cast %9 : vector<1x8x1xf32> to vector<8x1xf32>
    %11 = vector.shape_cast %10 : vector<8x1xf32> to vector<8x1xf32>
    %12 = vector.broadcast %11 : vector<8x1xf32> to vector<8x128xf32>
    %c0_8 = arith.constant 0 : index
    %c0_9 = arith.constant 0 : index
    %c0_10 = arith.constant 0 : index
    %13 = vector.load %arg1[%c0_8, %c0_9, %c0_10] : memref<4x40x128xbf16, #tpu.memory_space<vmem>>, vector<1x40x128xbf16>
    %14 = vector.shape_cast %13 : vector<1x40x128xbf16> to vector<40x128xbf16>
    %cst = arith.constant dense<0.000000e+00> : vector<8x128xf32>
    %15 = tpu.matmul %0, %14, %cst {dimension_numbers = #tpu.dot_dimension_numbers<[1], [0], [0], [1], [0, 0, 1, 1], [], []>} : vector<8x40xbf16>, vector<40x128xbf16>, vector<8x128xf32> -> vector<8x128xf32>
    %16 = arith.addf %15, %4 : vector<8x128xf32>
    %cst_11 = arith.constant 0.000000e+00 : f32
    %17 = vector.broadcast %cst_11 : f32 to vector<8x128xf32>
    %18 = arith.maximumf %16, %17 : vector<8x128xf32>
    %19 = arith.mulf %18, %8 : vector<8x128xf32>
    %20 = arith.addf %19, %12 : vector<8x128xf32>
    %c1_12 = arith.constant 1 : index
    %c0_13 = arith.constant 0 : index
    %c0_14 = arith.constant 0 : index
    %21 = vector.load %arg1[%c1_12, %c0_13, %c0_14] : memref<4x40x128xbf16, #tpu.memory_space<vmem>>, vector<1x40x128xbf16>
    %22 = vector.shape_cast %21 : vector<1x40x128xbf16> to vector<40x128xbf16>
    %cst_15 = arith.constant dense<0.000000e+00> : vector<8x128xf32>
    %23 = tpu.matmul %0, %22, %cst_15 {dimension_numbers = #tpu.dot_dimension_numbers<[1], [0], [0], [1], [0, 0, 1, 1], [], []>} : vector<8x40xbf16>, vector<40x128xbf16>, vector<8x128xf32> -> vector<8x128xf32>
    %24 = arith.addf %23, %4 : vector<8x128xf32>
    %cst_16 = arith.constant 0.000000e+00 : f32
    %25 = vector.broadcast %cst_16 : f32 to vector<8x128xf32>
    %26 = arith.maximumf %24, %25 : vector<8x128xf32>
    %27 = arith.mulf %26, %8 : vector<8x128xf32>
    %28 = arith.addf %27, %12 : vector<8x128xf32>
    %29 = arith.maximumf %20, %28 : vector<8x128xf32>
    %c2_17 = arith.constant 2 : index
    %c0_18 = arith.constant 0 : index
    %c0_19 = arith.constant 0 : index
    %30 = vector.load %arg1[%c2_17, %c0_18, %c0_19] : memref<4x40x128xbf16, #tpu.memory_space<vmem>>, vector<1x40x128xbf16>
    %31 = vector.shape_cast %30 : vector<1x40x128xbf16> to vector<40x128xbf16>
    %cst_20 = arith.constant dense<0.000000e+00> : vector<8x128xf32>
    %32 = tpu.matmul %0, %31, %cst_20 {dimension_numbers = #tpu.dot_dimension_numbers<[1], [0], [0], [1], [0, 0, 1, 1], [], []>} : vector<8x40xbf16>, vector<40x128xbf16>, vector<8x128xf32> -> vector<8x128xf32>
    %33 = arith.addf %32, %4 : vector<8x128xf32>
    %cst_21 = arith.constant 0.000000e+00 : f32
    %34 = vector.broadcast %cst_21 : f32 to vector<8x128xf32>
    %35 = arith.maximumf %33, %34 : vector<8x128xf32>
    %36 = arith.mulf %35, %8 : vector<8x128xf32>
    %37 = arith.addf %36, %12 : vector<8x128xf32>
    %38 = arith.maximumf %29, %37 : vector<8x128xf32>
    %c3 = arith.constant 3 : index
    %c0_22 = arith.constant 0 : index
    %c0_23 = arith.constant 0 : index
    %39 = vector.load %arg1[%c3, %c0_22, %c0_23] : memref<4x40x128xbf16, #tpu.memory_space<vmem>>, vector<1x40x128xbf16>
    %40 = vector.shape_cast %39 : vector<1x40x128xbf16> to vector<40x128xbf16>
    %cst_24 = arith.constant dense<0.000000e+00> : vector<8x128xf32>
    %41 = tpu.matmul %0, %40, %cst_24 {dimension_numbers = #tpu.dot_dimension_numbers<[1], [0], [0], [1], [0, 0, 1, 1], [], []>} : vector<8x40xbf16>, vector<40x128xbf16>, vector<8x128xf32> -> vector<8x128xf32>
    %42 = arith.addf %41, %4 : vector<8x128xf32>
    %cst_25 = arith.constant 0.000000e+00 : f32
    %43 = vector.broadcast %cst_25 : f32 to vector<8x128xf32>
    %44 = arith.maximumf %42, %43 : vector<8x128xf32>
    %45 = arith.mulf %44, %8 : vector<8x128xf32>
    %46 = arith.addf %45, %12 : vector<8x128xf32>
    %47 = arith.maximumf %38, %46 : vector<8x128xf32>
    %48 = arith.truncf %47 : vector<8x128xf32> to vector<8x128xbf16>
    %c0_26 = arith.constant 0 : index
    %c0_27 = arith.constant 0 : index
    %49 = vector.load %arg4[%c0_26, %c0_27] : memref<8x128xbf16, #tpu.memory_space<vmem>>, vector<8x128xbf16>
    tpu.vector_store %arg4[%c0_26, %c0_27], %48 {strides = array<i32>} : memref<8x128xbf16, #tpu.memory_space<vmem>>, vector<8x128xbf16>,
    return
  }
  func.func @transform_0(%arg0: i32) -> (i32, i32, i32) {
    %c0_i32 = arith.constant 0 : i32
    %c0_i32_0 = arith.constant 0 : i32
    %c0_i32_1 = arith.constant 0 : i32
    return %c0_i32, %c0_i32_0, %arg0 : i32, i32, i32
  }
  func.func @transform_1(%arg0: i32) -> (i32, i32) {
    %c0_i32 = arith.constant 0 : i32
    %c0_i32_0 = arith.constant 0 : i32
    %c0_i32_1 = arith.constant 0 : i32
    return %c0_i32, %c0_i32_0 : i32, i32
  }
  func.func @transform_2(%arg0: i32) -> (i32, i32, i32) {
    %c0_i32 = arith.constant 0 : i32
    %c0_i32_0 = arith.constant 0 : i32
    %c0_i32_1 = arith.constant 0 : i32
    %c0_i32_2 = arith.constant 0 : i32
    return %c0_i32, %c0_i32_0, %c0_i32_1 : i32, i32, i32
  }
  func.func @transform_3(%arg0: i32) -> (i32, i32) {
    %c0_i32 = arith.constant 0 : i32
    %c0_i32_0 = arith.constant 0 : i32
    return %c0_i32, %arg0 : i32, i32
  }
}

module attributes {stable_mosaic.version = 11 : i64} {
  func.func @conv_block_kernel(%arg0: i32, %arg1: memref<4x72x128xbf16, #tpu.memory_space<vmem>>, %arg2: memref<16x72xbf16, #tpu.memory_space<vmem>>, %arg3: memref<3x16x1xf32, #tpu.memory_space<vmem>>, %arg4: memref<16x128xbf16, #tpu.memory_space<vmem>>) attributes {dimension_semantics = [#tpu.dimension_semantics<parallel>], iteration_bounds = array<i64: 1>, scalar_prefetch = 0 : i64, scratch_operands = 0 : i64, tpu.core_type = #tpu.core_type<tc>, window_params = [{transform_indices = @transform_0, window_bounds = array<i64: 4, 72, 128>}, {pipeline_mode = #tpu.pipeline_mode<synchronous>, transform_indices = @transform_1, window_bounds = array<i64: 16, 72>}, {pipeline_mode = #tpu.pipeline_mode<synchronous>, transform_indices = @transform_2, window_bounds = array<i64: 3, 16, 1>}, {transform_indices = @transform_3, window_bounds = array<i64: 16, 128>}]} {
    %c0 = arith.constant 0 : index
    %c0_0 = arith.constant 0 : index
    %0 = vector.load %arg2[%c0, %c0_0] : memref<16x72xbf16, #tpu.memory_space<vmem>>, vector<16x72xbf16>
    %c0_1 = arith.constant 0 : index
    %c0_2 = arith.constant 0 : index
    %c0_3 = arith.constant 0 : index
    %1 = vector.load %arg3[%c0_1, %c0_2, %c0_3] : memref<3x16x1xf32, #tpu.memory_space<vmem>>, vector<1x16x1xf32>
    %2 = vector.shape_cast %1 : vector<1x16x1xf32> to vector<16x1xf32>
    %3 = vector.shape_cast %2 : vector<16x1xf32> to vector<16x1xf32>
    %4 = vector.broadcast %3 : vector<16x1xf32> to vector<16x128xf32>
    %c1 = arith.constant 1 : index
    %c0_4 = arith.constant 0 : index
    %c0_5 = arith.constant 0 : index
    %5 = vector.load %arg3[%c1, %c0_4, %c0_5] : memref<3x16x1xf32, #tpu.memory_space<vmem>>, vector<1x16x1xf32>
    %6 = vector.shape_cast %5 : vector<1x16x1xf32> to vector<16x1xf32>
    %7 = vector.shape_cast %6 : vector<16x1xf32> to vector<16x1xf32>
    %8 = vector.broadcast %7 : vector<16x1xf32> to vector<16x128xf32>
    %c2 = arith.constant 2 : index
    %c0_6 = arith.constant 0 : index
    %c0_7 = arith.constant 0 : index
    %9 = vector.load %arg3[%c2, %c0_6, %c0_7] : memref<3x16x1xf32, #tpu.memory_space<vmem>>, vector<1x16x1xf32>
    %10 = vector.shape_cast %9 : vector<1x16x1xf32> to vector<16x1xf32>
    %11 = vector.shape_cast %10 : vector<16x1xf32> to vector<16x1xf32>
    %12 = vector.broadcast %11 : vector<16x1xf32> to vector<16x128xf32>
    %c0_8 = arith.constant 0 : index
    %c0_9 = arith.constant 0 : index
    %c0_10 = arith.constant 0 : index
    %13 = vector.load %arg1[%c0_8, %c0_9, %c0_10] : memref<4x72x128xbf16, #tpu.memory_space<vmem>>, vector<1x72x128xbf16>
    %14 = vector.shape_cast %13 : vector<1x72x128xbf16> to vector<72x128xbf16>
    %cst = arith.constant dense<0.000000e+00> : vector<16x128xf32>
    %15 = tpu.matmul %0, %14, %cst {dimension_numbers = #tpu.dot_dimension_numbers<[1], [0], [0], [1], [0, 0, 1, 1], [], []>} : vector<16x72xbf16>, vector<72x128xbf16>, vector<16x128xf32> -> vector<16x128xf32>
    %16 = arith.addf %15, %4 : vector<16x128xf32>
    %cst_11 = arith.constant 0.000000e+00 : f32
    %17 = vector.broadcast %cst_11 : f32 to vector<16x128xf32>
    %18 = arith.maximumf %16, %17 : vector<16x128xf32>
    %19 = arith.mulf %18, %8 : vector<16x128xf32>
    %20 = arith.addf %19, %12 : vector<16x128xf32>
    %c1_12 = arith.constant 1 : index
    %c0_13 = arith.constant 0 : index
    %c0_14 = arith.constant 0 : index
    %21 = vector.load %arg1[%c1_12, %c0_13, %c0_14] : memref<4x72x128xbf16, #tpu.memory_space<vmem>>, vector<1x72x128xbf16>
    %22 = vector.shape_cast %21 : vector<1x72x128xbf16> to vector<72x128xbf16>
    %cst_15 = arith.constant dense<0.000000e+00> : vector<16x128xf32>
    %23 = tpu.matmul %0, %22, %cst_15 {dimension_numbers = #tpu.dot_dimension_numbers<[1], [0], [0], [1], [0, 0, 1, 1], [], []>} : vector<16x72xbf16>, vector<72x128xbf16>, vector<16x128xf32> -> vector<16x128xf32>
    %24 = arith.addf %23, %4 : vector<16x128xf32>
    %cst_16 = arith.constant 0.000000e+00 : f32
    %25 = vector.broadcast %cst_16 : f32 to vector<16x128xf32>
    %26 = arith.maximumf %24, %25 : vector<16x128xf32>
    %27 = arith.mulf %26, %8 : vector<16x128xf32>
    %28 = arith.addf %27, %12 : vector<16x128xf32>
    %29 = arith.maximumf %20, %28 : vector<16x128xf32>
    %c2_17 = arith.constant 2 : index
    %c0_18 = arith.constant 0 : index
    %c0_19 = arith.constant 0 : index
    %30 = vector.load %arg1[%c2_17, %c0_18, %c0_19] : memref<4x72x128xbf16, #tpu.memory_space<vmem>>, vector<1x72x128xbf16>
    %31 = vector.shape_cast %30 : vector<1x72x128xbf16> to vector<72x128xbf16>
    %cst_20 = arith.constant dense<0.000000e+00> : vector<16x128xf32>
    %32 = tpu.matmul %0, %31, %cst_20 {dimension_numbers = #tpu.dot_dimension_numbers<[1], [0], [0], [1], [0, 0, 1, 1], [], []>} : vector<16x72xbf16>, vector<72x128xbf16>, vector<16x128xf32> -> vector<16x128xf32>
    %33 = arith.addf %32, %4 : vector<16x128xf32>
    %cst_21 = arith.constant 0.000000e+00 : f32
    %34 = vector.broadcast %cst_21 : f32 to vector<16x128xf32>
    %35 = arith.maximumf %33, %34 : vector<16x128xf32>
    %36 = arith.mulf %35, %8 : vector<16x128xf32>
    %37 = arith.addf %36, %12 : vector<16x128xf32>
    %38 = arith.maximumf %29, %37 : vector<16x128xf32>
    %c3 = arith.constant 3 : index
    %c0_22 = arith.constant 0 : index
    %c0_23 = arith.constant 0 : index
    %39 = vector.load %arg1[%c3, %c0_22, %c0_23] : memref<4x72x128xbf16, #tpu.memory_space<vmem>>, vector<1x72x128xbf16>
    %40 = vector.shape_cast %39 : vector<1x72x128xbf16> to vector<72x128xbf16>
    %cst_24 = arith.constant dense<0.000000e+00> : vector<16x128xf32>
    %41 = tpu.matmul %0, %40, %cst_24 {dimension_numbers = #tpu.dot_dimension_numbers<[1], [0], [0], [1], [0, 0, 1, 1], [], []>} : vector<16x72xbf16>, vector<72x128xbf16>, vector<16x128xf32> -> vector<16x128xf32>
    %42 = arith.addf %41, %4 : vector<16x128xf32>
    %cst_25 = arith.constant 0.000000e+00 : f32
    %43 = vector.broadcast %cst_25 : f32 to vector<16x128xf32>
    %44 = arith.maximumf %42, %43 : vector<16x128xf32>
    %45 = arith.mulf %44, %8 : vector<16x128xf32>
    %46 = arith.addf %45, %12 : vector<16x128xf32>
    %47 = arith.maximumf %38, %46 : vector<16x128xf32>
    %48 = arith.truncf %47 : vector<16x128xf32> to vector<16x128xbf16>
    %c0_26 = arith.constant 0 : index
    %c0_27 = arith.constant 0 : index
    %49 = vector.load %arg4[%c0_26, %c0_27] : memref<16x128xbf16, #tpu.memory_space<vmem>>, vector<16x128xbf16>
    tpu.vector_store %arg4[%c0_26, %c0_27], %48 {strides = array<i32>} : memref<16x128xbf16, #tpu.memory_space<vmem>>, vector<16x128xbf16>,
    return
  }
  func.func @transform_0(%arg0: i32) -> (i32, i32, i32) {
    %c0_i32 = arith.constant 0 : i32
    %c0_i32_0 = arith.constant 0 : i32
    %c0_i32_1 = arith.constant 0 : i32
    return %c0_i32, %c0_i32_0, %arg0 : i32, i32, i32
  }
  func.func @transform_1(%arg0: i32) -> (i32, i32) {
    %c0_i32 = arith.constant 0 : i32
    %c0_i32_0 = arith.constant 0 : i32
    %c0_i32_1 = arith.constant 0 : i32
    return %c0_i32, %c0_i32_0 : i32, i32
  }
  func.func @transform_2(%arg0: i32) -> (i32, i32, i32) {
    %c0_i32 = arith.constant 0 : i32
    %c0_i32_0 = arith.constant 0 : i32
    %c0_i32_1 = arith.constant 0 : i32
    %c0_i32_2 = arith.constant 0 : i32
    return %c0_i32, %c0_i32_0, %c0_i32_1 : i32, i32, i32
  }
  func.func @transform_3(%arg0: i32) -> (i32, i32) {
    %c0_i32 = arith.constant 0 : i32
    %c0_i32_0 = arith.constant 0 : i32
    return %c0_i32, %arg0 : i32, i32
  }
}

module attributes {stable_mosaic.version = 11 : i64} {
  func.func @fc_kernel(%arg0: i32, %arg1: memref<8x144xbf16, #tpu.memory_space<vmem>>, %arg2: memref<144x120xbf16, #tpu.memory_space<vmem>>, %arg3: memref<3x1x120xf32, #tpu.memory_space<vmem>>, %arg4: memref<120x32xbf16, #tpu.memory_space<vmem>>, %arg5: memref<3x1x32xf32, #tpu.memory_space<vmem>>, %arg6: memref<32x10xbf16, #tpu.memory_space<vmem>>, %arg7: memref<1x10xf32, #tpu.memory_space<vmem>>, %arg8: memref<8x10xf32, #tpu.memory_space<vmem>>) attributes {dimension_semantics = [#tpu.dimension_semantics<parallel>], iteration_bounds = array<i64: 1>, scalar_prefetch = 0 : i64, scratch_operands = 0 : i64, tpu.core_type = #tpu.core_type<tc>, window_params = [{transform_indices = @transform_0, window_bounds = array<i64: 8, 144>}, {pipeline_mode = #tpu.pipeline_mode<synchronous>, transform_indices = @transform_1, window_bounds = array<i64: 144, 120>}, {pipeline_mode = #tpu.pipeline_mode<synchronous>, transform_indices = @transform_2, window_bounds = array<i64: 3, 1, 120>}, {pipeline_mode = #tpu.pipeline_mode<synchronous>, transform_indices = @transform_3, window_bounds = array<i64: 120, 32>}, {pipeline_mode = #tpu.pipeline_mode<synchronous>, transform_indices = @transform_4, window_bounds = array<i64: 3, 1, 32>}, {pipeline_mode = #tpu.pipeline_mode<synchronous>, transform_indices = @transform_5, window_bounds = array<i64: 32, 10>}, {pipeline_mode = #tpu.pipeline_mode<synchronous>, transform_indices = @transform_6, window_bounds = array<i64: 1, 10>}, {transform_indices = @transform_7, window_bounds = array<i64: 8, 10>}]} {
    %c0 = arith.constant 0 : index
    %c0_0 = arith.constant 0 : index
    %0 = vector.load %arg1[%c0, %c0_0] : memref<8x144xbf16, #tpu.memory_space<vmem>>, vector<8x144xbf16>
    %c0_1 = arith.constant 0 : index
    %c0_2 = arith.constant 0 : index
    %1 = vector.load %arg2[%c0_1, %c0_2] : memref<144x120xbf16, #tpu.memory_space<vmem>>, vector<144x120xbf16>
    %cst = arith.constant dense<0.000000e+00> : vector<8x120xf32>
    %2 = tpu.matmul %0, %1, %cst {dimension_numbers = #tpu.dot_dimension_numbers<[1], [0], [0], [1], [0, 0, 1, 1], [], []>} : vector<8x144xbf16>, vector<144x120xbf16>, vector<8x120xf32> -> vector<8x120xf32>
    %c0_3 = arith.constant 0 : index
    %c0_4 = arith.constant 0 : index
    %c0_5 = arith.constant 0 : index
    %3 = vector.load %arg3[%c0_3, %c0_4, %c0_5] : memref<3x1x120xf32, #tpu.memory_space<vmem>>, vector<1x1x120xf32>
    %4 = vector.shape_cast %3 : vector<1x1x120xf32> to vector<1x120xf32>
    %5 = vector.broadcast %4 : vector<1x120xf32> to vector<8x120xf32>
    %6 = arith.addf %2, %5 : vector<8x120xf32>
    %cst_6 = arith.constant 0.000000e+00 : f32
    %7 = vector.broadcast %cst_6 : f32 to vector<8x120xf32>
    %8 = arith.maximumf %6, %7 : vector<8x120xf32>
    %c1 = arith.constant 1 : index
    %c0_7 = arith.constant 0 : index
    %c0_8 = arith.constant 0 : index
    %9 = vector.load %arg3[%c1, %c0_7, %c0_8] : memref<3x1x120xf32, #tpu.memory_space<vmem>>, vector<1x1x120xf32>
    %10 = vector.shape_cast %9 : vector<1x1x120xf32> to vector<1x120xf32>
    %11 = vector.broadcast %10 : vector<1x120xf32> to vector<8x120xf32>
    %12 = arith.mulf %8, %11 : vector<8x120xf32>
    %c2 = arith.constant 2 : index
    %c0_9 = arith.constant 0 : index
    %c0_10 = arith.constant 0 : index
    %13 = vector.load %arg3[%c2, %c0_9, %c0_10] : memref<3x1x120xf32, #tpu.memory_space<vmem>>, vector<1x1x120xf32>
    %14 = vector.shape_cast %13 : vector<1x1x120xf32> to vector<1x120xf32>
    %15 = vector.broadcast %14 : vector<1x120xf32> to vector<8x120xf32>
    %16 = arith.addf %12, %15 : vector<8x120xf32>
    %17 = arith.truncf %16 : vector<8x120xf32> to vector<8x120xbf16>
    %c0_11 = arith.constant 0 : index
    %c0_12 = arith.constant 0 : index
    %18 = vector.load %arg4[%c0_11, %c0_12] : memref<120x32xbf16, #tpu.memory_space<vmem>>, vector<120x32xbf16>
    %cst_13 = arith.constant dense<0.000000e+00> : vector<8x32xf32>
    %19 = tpu.matmul %17, %18, %cst_13 {dimension_numbers = #tpu.dot_dimension_numbers<[1], [0], [0], [1], [0, 0, 1, 1], [], []>} : vector<8x120xbf16>, vector<120x32xbf16>, vector<8x32xf32> -> vector<8x32xf32>
    %c0_14 = arith.constant 0 : index
    %c0_15 = arith.constant 0 : index
    %c0_16 = arith.constant 0 : index
    %20 = vector.load %arg5[%c0_14, %c0_15, %c0_16] : memref<3x1x32xf32, #tpu.memory_space<vmem>>, vector<1x1x32xf32>
    %21 = vector.shape_cast %20 : vector<1x1x32xf32> to vector<1x32xf32>
    %22 = vector.broadcast %21 : vector<1x32xf32> to vector<8x32xf32>
    %23 = arith.addf %19, %22 : vector<8x32xf32>
    %cst_17 = arith.constant 0.000000e+00 : f32
    %24 = vector.broadcast %cst_17 : f32 to vector<8x32xf32>
    %25 = arith.maximumf %23, %24 : vector<8x32xf32>
    %c1_18 = arith.constant 1 : index
    %c0_19 = arith.constant 0 : index
    %c0_20 = arith.constant 0 : index
    %26 = vector.load %arg5[%c1_18, %c0_19, %c0_20] : memref<3x1x32xf32, #tpu.memory_space<vmem>>, vector<1x1x32xf32>
    %27 = vector.shape_cast %26 : vector<1x1x32xf32> to vector<1x32xf32>
    %28 = vector.broadcast %27 : vector<1x32xf32> to vector<8x32xf32>
    %29 = arith.mulf %25, %28 : vector<8x32xf32>
    %c2_21 = arith.constant 2 : index
    %c0_22 = arith.constant 0 : index
    %c0_23 = arith.constant 0 : index
    %30 = vector.load %arg5[%c2_21, %c0_22, %c0_23] : memref<3x1x32xf32, #tpu.memory_space<vmem>>, vector<1x1x32xf32>
    %31 = vector.shape_cast %30 : vector<1x1x32xf32> to vector<1x32xf32>
    %32 = vector.broadcast %31 : vector<1x32xf32> to vector<8x32xf32>
    %33 = arith.addf %29, %32 : vector<8x32xf32>
    %34 = arith.truncf %33 : vector<8x32xf32> to vector<8x32xbf16>
    %c0_24 = arith.constant 0 : index
    %c0_25 = arith.constant 0 : index
    %35 = vector.load %arg6[%c0_24, %c0_25] : memref<32x10xbf16, #tpu.memory_space<vmem>>, vector<32x10xbf16>
    %cst_26 = arith.constant dense<0.000000e+00> : vector<8x10xf32>
    %36 = tpu.matmul %34, %35, %cst_26 {dimension_numbers = #tpu.dot_dimension_numbers<[1], [0], [0], [1], [0, 0, 1, 1], [], []>} : vector<8x32xbf16>, vector<32x10xbf16>, vector<8x10xf32> -> vector<8x10xf32>
    %c0_27 = arith.constant 0 : index
    %c0_28 = arith.constant 0 : index
    %37 = vector.load %arg7[%c0_27, %c0_28] : memref<1x10xf32, #tpu.memory_space<vmem>>, vector<1x10xf32>
    %38 = vector.broadcast %37 : vector<1x10xf32> to vector<8x10xf32>
    %39 = arith.addf %36, %38 : vector<8x10xf32>
    %c0_29 = arith.constant 0 : index
    %c0_30 = arith.constant 0 : index
    %40 = vector.load %arg8[%c0_29, %c0_30] : memref<8x10xf32, #tpu.memory_space<vmem>>, vector<8x10xf32>
    tpu.vector_store %arg8[%c0_29, %c0_30], %39 {strides = array<i32>} : memref<8x10xf32, #tpu.memory_space<vmem>>, vector<8x10xf32>,
    return
  }
  func.func @transform_0(%arg0: i32) -> (i32, i32) {
    %c0_i32 = arith.constant 0 : i32
    %c0_i32_0 = arith.constant 0 : i32
    return %arg0, %c0_i32 : i32, i32
  }
  func.func @transform_1(%arg0: i32) -> (i32, i32) {
    %c0_i32 = arith.constant 0 : i32
    %c0_i32_0 = arith.constant 0 : i32
    %c0_i32_1 = arith.constant 0 : i32
    return %c0_i32, %c0_i32_0 : i32, i32
  }
  func.func @transform_2(%arg0: i32) -> (i32, i32, i32) {
    %c0_i32 = arith.constant 0 : i32
    %c0_i32_0 = arith.constant 0 : i32
    %c0_i32_1 = arith.constant 0 : i32
    %c0_i32_2 = arith.constant 0 : i32
    return %c0_i32, %c0_i32_0, %c0_i32_1 : i32, i32, i32
  }
  func.func @transform_3(%arg0: i32) -> (i32, i32) {
    %c0_i32 = arith.constant 0 : i32
    %c0_i32_0 = arith.constant 0 : i32
    %c0_i32_1 = arith.constant 0 : i32
    return %c0_i32, %c0_i32_0 : i32, i32
  }
  func.func @transform_4(%arg0: i32) -> (i32, i32, i32) {
    %c0_i32 = arith.constant 0 : i32
    %c0_i32_0 = arith.constant 0 : i32
    %c0_i32_1 = arith.constant 0 : i32
    %c0_i32_2 = arith.constant 0 : i32
    return %c0_i32, %c0_i32_0, %c0_i32_1 : i32, i32, i32
  }
  func.func @transform_5(%arg0: i32) -> (i32, i32) {
    %c0_i32 = arith.constant 0 : i32
    %c0_i32_0 = arith.constant 0 : i32
    %c0_i32_1 = arith.constant 0 : i32
    return %c0_i32, %c0_i32_0 : i32, i32
  }
  func.func @transform_6(%arg0: i32) -> (i32, i32) {
    %c0_i32 = arith.constant 0 : i32
    %c0_i32_0 = arith.constant 0 : i32
    %c0_i32_1 = arith.constant 0 : i32
    return %c0_i32, %c0_i32_0 : i32, i32
  }
  func.func @transform_7(%arg0: i32) -> (i32, i32) {
    %c0_i32 = arith.constant 0 : i32
    %c0_i32_0 = arith.constant 0 : i32
    return %arg0, %c0_i32 : i32, i32
  }
}

</mosaic_0001>

<bundles_post_ra>
// kernel: mnist_cnn_forward.4
= control target key start
LH: loop header
LB: loop body
LE: loop exit
PB: predicated region body
PF: predicated region fallthrough
CT: control target
= control target key end

     0   :  { %vm60_vm0 = vcmask 130048   ;;  %v528_v3 = vmov 0   ;;  %s751_s0 = inlined_call_operand.vmem [shape: bf16[4,16,512], index: 0, kind: input, shape index: {}]   ;;  %s752_s1 = inlined_call_operand.vmem [shape: bf16[8,16], index: 1, kind: input, shape index: {}]   ;;  %s753_s2 = inlined_call_operand.vmem [shape: f32[3,8,1], index: 2, kind: input, shape index: {}]   ;;  %s754_s3 = inlined_call_operand.vmem [shape: bf16[8,512], index: 3, kind: output, shape index: {}]  }
   0x1   :  { %v419_v0 = vld [vmem:[%s751_s0] sm:$0xf]  ;;  %v511_v1 = vld [vmem:[%s751_s0 + $0xc] sm:$0xf0]  ;;  %v509_v2 = vld [vmem:[%s751_s0 + $0x4] sm:$0xf]  ;;  %526 = vset.pattern.permute.xlu0 %v528_v3  ;;  %527 = vset.pattern.permute.xlu1 %v528_v3 }
   0x2   :  { %v420_v4 = vor.u32 %v511_v1, %v419_v0  ;;  %v421_v5 = vld [vmem:[%s751_s0 + $0x10] sm:$0xf0]  ;;  %v427_v6 = vld [vmem:[%s751_s0 + $0x8] sm:$0xf]  ;;  %v512_v7 = vld [vmem:[%s751_s0 + $0x14] sm:$0xf0] }
   0x3   :  { %v424_v8 = vor.u32 %v509_v2, %v421_v5  ;;  %v428_v9 = vor.u32 %v512_v7, %v427_v6  ;;  %v510_v10 = vld [vmem:[%s751_s0 + $0xc] sm:$0xf]  ;;  %v429_v11 = vld [vmem:[%s751_s0 + $0x18] sm:$0xf0]  ;;  %v576_v12 = vld [vmem:[%s752_s1] sm:$0xf] }
   0x4   :  { %71 = vmatpush.bf16.msra.mxu0 %v420_v4  ;;  %v432_v13 = vor.u32 %v510_v10, %v429_v11  ;;  %v451_v14 = vld [vmem:[%s751_s0 + $0x28] sm:$0xf]  ;;  %v516_v15 = vld [vmem:[%s751_s0 + $0x34] sm:$0xf0]  ;;  %v514_v16 = vld [vmem:[%s751_s0 + $0x2c] sm:$0xf] }
   0x5   :  { %84 = vmatpush.bf16.msra.mxu1 %v424_v8  ;;  %97 = vmatpush.bf16.msra.mxu2 %v428_v9  ;;  %v452_v17 = vor.u32 %v516_v15, %v451_v14  ;;  %v453_v18 = vld [vmem:[%s751_s0 + $0x38] sm:$0xf0]  ;;  %v443_v19 = vld [vmem:[%s751_s0 + $0x20] sm:$0xf]  ;;  %v515_v20 = vld [vmem:[%s751_s0 + $0x2c] sm:$0xf0] }
   0x6   :  { %110 = vmatpush.bf16.msra.mxu3 %v432_v13  ;;  %v456_v21 = vor.u32 %v514_v16, %v453_v18  ;;  %v444_v22 = vor.u32 %v515_v20, %v443_v19  ;;  %v513_v23 = vld [vmem:[%s751_s0 + $0x24] sm:$0xf]  ;;  %v445_v24 = vld [vmem:[%s751_s0 + $0x30] sm:$0xf0]  ;;  %v475_v26 = vld [vmem:[%s751_s0 + $0x48] sm:$0xf] }
   0x7   :  { %433 = vmatmul.msk.bf16.vlgmr.msra.gmra.mxu0 %vm60_vm0, %v576_v12  ;;  %v448_v25 = vor.u32 %v513_v23, %v445_v24  ;;  %v520_v27 = vld [vmem:[%s751_s0 + $0x54] sm:$0xf0]  ;;  %v518_v28 = vld [vmem:[%s751_s0 + $0x4c] sm:$0xf]  ;;  %v16_v29 = vld [vmem:[%s753_s2] sm:$0xff] }
   0x8   :  { %434 = vmatmul.msk.bf16.vlgmr.msra.gmra.mxu1 %vm60_vm0, %v576_v12  ;;  %435 = vmatmul.msk.bf16.vlgmr.msra.gmra.mxu2 %vm60_vm0, %v576_v12  ;;  %v476_v30 = vor.u32 %v520_v27, %v475_v26  ;;  %v477_v31 = vld [vmem:[%s751_s0 + $0x58] sm:$0xf0]  ;;  %v467_v32 = vld [vmem:[%s751_s0 + $0x40] sm:$0xf]  ;;  %v519_v34 = vld [vmem:[%s751_s0 + $0x4c] sm:$0xf0] }
   0x9   :  { %186 = vmatpush.bf16.msrb.mxu2 %v452_v17  ;;  %436 = vmatmul.msk.bf16.vlgmr.msra.gmra.mxu3 %vm60_vm0, %v576_v12  ;;  %v480_v33 = vor.u32 %v518_v28, %v477_v31  ;;  %v517_v35 = vld [vmem:[%s751_s0 + $0x44] sm:$0xf]  ;;  %v469_v36 = vld [vmem:[%s751_s0 + $0x50] sm:$0xf0]  ;;  %v468_v37 = vor.u32 %v519_v34, %v467_v32  ;;  %v415_v40 = vld [vmem:[%s753_s2 + $0x8] sm:$0xff] }
   0xa   :  { %160 = vmatpush.bf16.msrb.mxu0 %v444_v22  ;;  %199 = vmatpush.bf16.msrb.mxu3 %v456_v21  ;;  %v472_v38 = vor.u32 %v517_v35, %v469_v36  ;;  %v416_v39 = vld [vmem:[%s753_s2 + $0x10] sm:$0xff]  ;;  %v499_v41 = vld [vmem:[%s751_s0 + $0x68] sm:$0xf]  ;;  %v524_v42 = vld [vmem:[%s751_s0 + $0x74] sm:$0xf0] }
   0xb   :  { %173 = vmatpush.bf16.msrb.mxu1 %v448_v25  ;;  %19 = vperm.xlu0 %526, %v16_v29   ;;  %v522_v43 = vld [vmem:[%s751_s0 + $0x6c] sm:$0xf]  ;;  %v501_v44 = vld [vmem:[%s751_s0 + $0x78] sm:$0xf0]  ;;  %v491_v45 = vld [vmem:[%s751_s0 + $0x60] sm:$0xf]  ;;  %v500_v49 = vor.u32 %v524_v42, %v499_v41 }
   0xc   :  { %33 = vperm.xlu1 %527, %v416_v39   ;;  %v523_v46 = vld [vmem:[%s751_s0 + $0x6c] sm:$0xf0]  ;;  %v521_v47 = vld [vmem:[%s751_s0 + $0x64] sm:$0xf]  ;;  %v493_v48 = vld [vmem:[%s751_s0 + $0x70] sm:$0xf0]  ;;  %v504_v50 = vor.u32 %v522_v43, %v501_v44 }
   0xd   :  { %279 = vmatpush.bf16.msra.mxu2 %v476_v30  ;;  %v492_v51 = vor.u32 %v523_v46, %v491_v45  ;;  %v496_v52 = vor.u32 %v521_v47, %v493_v48 }
   0xe   :  { %292 = vmatpush.bf16.msra.mxu3 %v480_v33  ;;  %253 = vmatpush.bf16.msra.mxu0 %v468_v37 }
   0xf   :  { %266 = vmatpush.bf16.msra.mxu1 %v472_v38 }
  0x13   :  { %26 = vperm.xlu0 %526, %v415_v40  }
  0x17   :  { %457 = vmatmul.msk.bf16.vlgmr.msrb.gmra.mxu0 %vm60_vm0, %v576_v12 }
  0x18   :  { %458 = vmatmul.msk.bf16.vlgmr.msrb.gmra.mxu1 %vm60_vm0, %v576_v12  ;;  %459 = vmatmul.msk.bf16.vlgmr.msrb.gmra.mxu2 %vm60_vm0, %v576_v12 }
  0x19   :  { %460 = vmatmul.msk.bf16.vlgmr.msrb.gmra.mxu3 %vm60_vm0, %v576_v12  ;;  %372 = vmatpush.bf16.msrb.mxu2 %v500_v49 }
  0x1a   :  { %385 = vmatpush.bf16.msrb.mxu3 %v504_v50  ;;  %346 = vmatpush.bf16.msrb.mxu0 %v492_v51 }
  0x1b   :  { %359 = vmatpush.bf16.msrb.mxu1 %v496_v52 }
  0x27   :  { %481 = vmatmul.msk.bf16.vlgmr.msra.gmra.mxu0 %vm60_vm0, %v576_v12 }
  0x28   :  { %482 = vmatmul.msk.bf16.vlgmr.msra.gmra.mxu1 %vm60_vm0, %v576_v12  ;;  %483 = vmatmul.msk.bf16.vlgmr.msra.gmra.mxu2 %vm60_vm0, %v576_v12 }
  0x29   :  { %484 = vmatmul.msk.bf16.vlgmr.msra.gmra.mxu3 %vm60_vm0, %v576_v12 }
  0x37   :  { %505 = vmatmul.msk.bf16.vlgmr.msrb.gmra.mxu0 %vm60_vm0, %v576_v12 }
  0x38   :  { %506 = vmatmul.msk.bf16.vlgmr.msrb.gmra.mxu1 %vm60_vm0, %v576_v12  ;;  %507 = vmatmul.msk.bf16.vlgmr.msrb.gmra.mxu2 %vm60_vm0, %v576_v12 }
  0x39   :  { %508 = vmatmul.msk.bf16.vlgmr.msrb.gmra.mxu3 %vm60_vm0, %v576_v12 }
  0x7d   :  { %v691_v3 = vpop.permute.xlu0 %19 }
  0x7e   :  { %v706_v30 = vpop.permute.xlu1 %33 }
  0x84   :  { %v73_v53 = vpop.f32.mrf.mxu0 }
  0x85   :  { %v86_v54 = vpop.f32.mrf.mxu1  ;;  %v74_v8 = vadd.f32 %v73_v53, %v691_v3  ;;  %v699_v20 = vpop.permute.xlu0 %26 }
  0x86   :  { %v87_v13 = vadd.f32 %v86_v54, %v691_v3 }
  0x87   :  { %v116_v17 = vmax.f32 %v74_v8, 0.0 }
  0x88   :  { %v117_v23 = vmax.f32 %v87_v13, 0.0 }
  0x89   :  { %v120_v26 = vmul.f32 %v116_v17, %v699_v20 }
  0x8a   :  { %v121_v37 = vmul.f32 %v117_v23, %v699_v20 }
  0x8b   :  { %v99_v55 = vpop.f32.mrf.mxu2  ;;  %v124_v42 = vadd.f32 %v120_v26, %v706_v30 }
  0x8c   :  { %v112_v56 = vpop.f32.mrf.mxu3  ;;  %v75_v57 = vpop.f32.mrf.mxu0  ;;  %v100_v29 = vadd.f32 %v99_v55, %v691_v3  ;;  %v125_v55 = vadd.f32 %v121_v37, %v706_v30 }
  0x8d   :  { %v88_v58 = vpop.f32.mrf.mxu1  ;;  %v113_v33 = vadd.f32 %v112_v56, %v691_v3 }
  0x8e   :  { %v118_v47 = vmax.f32 %v100_v29, 0.0 }
  0x8f   :  { %v119_v51 = vmax.f32 %v113_v33, 0.0 }
  0x93   :  { %v101_v59 = vpop.f32.mrf.mxu2 }
  0x94   :  { %v114_v60 = vpop.f32.mrf.mxu3  ;;  %v162_v61 = vpop.f32.mrf.mxu0 }
  0x95   :  { %v175_v62 = vpop.f32.mrf.mxu1  ;;  %v163_v9 = vadd.f32 %v162_v61, %v691_v3 }
  0x96   :  { %v176_v10 = vadd.f32 %v175_v62, %v691_v3 }
  0x97   :  { %v205_v18 = vmax.f32 %v163_v9, 0.0 }
  0x98   :  { %v206_v21 = vmax.f32 %v176_v10, 0.0 }
  0x99   :  { %v209_v27 = vmul.f32 %v205_v18, %v699_v20 }
  0x9a   :  { %v210_v31 = vmul.f32 %v206_v21, %v699_v20 }
  0x9b   :  { %v188_v63 = vpop.f32.mrf.mxu2  ;;  %v213_v43 = vadd.f32 %v209_v27, %v706_v30 }
  0x9c   :  { %v201_v0 = vpop.f32.mrf.mxu3  ;;  %v164_v1 = vpop.f32.mrf.mxu0  ;;  %v189_v24 = vadd.f32 %v188_v63, %v691_v3  ;;  %v214_v48 = vadd.f32 %v210_v31, %v706_v30  ;;  %v122_v63 = vmul.f32 %v118_v47, %v699_v20 }
  0x9d   :  { %v177_v2 = vpop.f32.mrf.mxu1  ;;  %v202_v28 = vadd.f32 %v201_v0, %v691_v3  ;;  %v217_v59 = vmax.f32 %v124_v42, %v213_v43 }
  0x9e   :  { %v207_v38 = vmax.f32 %v189_v24, 0.0  ;;  %v218_v62 = vmax.f32 %v125_v55, %v214_v48  ;;  %v123_v2 = vmul.f32 %v119_v51, %v699_v20  ;;  %v126_v18 = vadd.f32 %v122_v63, %v706_v30 }
  0x9f   :  { %v208_v44 = vmax.f32 %v202_v28, 0.0 }
  0xa0   :  { %v211_v56 = vmul.f32 %v207_v38, %v699_v20  ;;  %v127_v23 = vadd.f32 %v123_v2, %v706_v30 }
  0xa1   :  { %v212_v60 = vmul.f32 %v208_v44, %v699_v20 }
  0xa2   :  { %v215_v8 = vadd.f32 %v211_v56, %v706_v30 }
  0xa3   :  { %v190_v4 = vpop.f32.mrf.mxu2 }
  0xa4   :  { %v203_v5 = vpop.f32.mrf.mxu3  ;;  %v255_v6 = vpop.f32.mrf.mxu0  ;;  %v219_v26 = vmax.f32 %v126_v18, %v215_v8 }
  0xa5   :  { %v268_v7 = vpop.f32.mrf.mxu1  ;;  %v256_v11 = vadd.f32 %v255_v6, %v691_v3 }
  0xa6   :  { %v269_v14 = vadd.f32 %v268_v7, %v691_v3 }
  0xa7   :  { %v298_v22 = vmax.f32 %v256_v11, 0.0 }
  0xa8   :  { %v299_v25 = vmax.f32 %v269_v14, 0.0  ;;  %v216_v14 = vadd.f32 %v212_v60, %v706_v30 }
  0xa9   :  { %v302_v34 = vmul.f32 %v298_v22, %v699_v20 }
  0xaa   :  { %v303_v39 = vmul.f32 %v299_v25, %v699_v20  ;;  %v220_v29 = vmax.f32 %v127_v23, %v216_v14 }
  0xab   :  { %v281_v12 = vpop.f32.mrf.mxu2  ;;  %v306_v52 = vadd.f32 %v302_v34, %v706_v30 }
  0xac   :  { %v294_v15 = vpop.f32.mrf.mxu3  ;;  %v257_v16 = vpop.f32.mrf.mxu0  ;;  %v282_v32 = vadd.f32 %v281_v12, %v691_v3  ;;  %v307_v57 = vadd.f32 %v303_v39, %v706_v30 }
  0xad   :  { %v270_v19 = vpop.f32.mrf.mxu1  ;;  %v295_v35 = vadd.f32 %v294_v15, %v691_v3  ;;  %v310_v4 = vmax.f32 %v217_v59, %v306_v52 }
  0xae   :  { %v300_v49 = vmax.f32 %v282_v32, 0.0  ;;  %v311_v9 = vmax.f32 %v218_v62, %v307_v57 }
  0xaf   :  { %v301_v53 = vmax.f32 %v295_v35, 0.0 }
  0xb0   :  { %v304_v0 = vmul.f32 %v300_v49, %v699_v20 }
  0xb1   :  { %v305_v5 = vmul.f32 %v301_v53, %v699_v20 }
  0xb2   :  { %v308_v19 = vadd.f32 %v304_v0, %v706_v30 }
  0xb3   :  { %v283_v36 = vpop.f32.mrf.mxu2  ;;  %v309_v24 = vadd.f32 %v305_v5, %v706_v30 }
  0xb4   :  { %v296_v40 = vpop.f32.mrf.mxu3  ;;  %v348_v41 = vpop.f32.mrf.mxu0 }
  0xb5   :  { %v349_v45 = vadd.f32 %v348_v41, %v691_v3  ;;  %v361_v46 = vpop.f32.mrf.mxu1  ;;  %v313_v33 = vmax.f32 %v220_v29, %v309_v24 }
  0xb6   :  { %v362_v50 = vadd.f32 %v361_v46, %v691_v3 }
  0xb7   :  { %v391_v54 = vmax.f32 %v349_v45, 0.0 }
  0xb8   :  { %v392_v58 = vmax.f32 %v362_v50, 0.0 }
  0xb9   :  { %v395_v61 = vmul.f32 %v391_v54, %v699_v20 }
  0xba   :  { %v396_v1 = vmul.f32 %v392_v58, %v699_v20 }
  0xbb   :  { %v399_v6 = vadd.f32 %v395_v61, %v706_v30  ;;  %v374_v7 = vpop.f32.mrf.mxu2 }
  0xbc   :  { %v400_v10 = vadd.f32 %v396_v1, %v706_v30  ;;  %v375_v11 = vadd.f32 %v374_v7, %v691_v3  ;;  %v387_v12 = vpop.f32.mrf.mxu3  ;;  %v350_v13 = vpop.f32.mrf.mxu0 }
  0xbd   :  { %v403_v15 = vmax.f32 %v310_v4, %v399_v6  ;;  %v388_v16 = vadd.f32 %v387_v12, %v691_v3  ;;  %v363_v17 = vpop.f32.mrf.mxu1  ;;  %v312_v3 = vmax.f32 %v219_v26, %v308_v19 }
  0xbe   :  { %v404_v21 = vmax.f32 %v311_v9, %v400_v10  ;;  %v393_v22 = vmax.f32 %v375_v11, 0.0 }
  0xbf   :  { %v394_v25 = vmax.f32 %v388_v16, 0.0 }
  0xc0   :  { %v407_v27 = vpack.c.bf16 %v404_v21, %v403_v15  ;;  %v397_v28 = vmul.f32 %v393_v22, %v699_v20 }
  0xc1   :  { %v398_v31 = vmul.f32 %v394_v25, %v699_v20 }
  0xc2   :  { %409 = vst [vmem:[%s754_s3] sm:$0xff] %v407_v27  ;;  %v401_v32 = vadd.f32 %v397_v28, %v706_v30 }
  0xc3   :  { %v402_v34 = vadd.f32 %v398_v31, %v706_v30  ;;  %v376_v35 = vpop.f32.mrf.mxu2 }
  0xc4   :  { %v405_v36 = vmax.f32 %v312_v3, %v401_v32  ;;  %v389_v37 = vpop.f32.mrf.mxu3 }
  0xc5   :  { %v406_v38 = vmax.f32 %v313_v33, %v402_v34 }
  0xc7   :  { %v408_v39 = vpack.c.bf16 %v406_v38, %v405_v36 }
  0xc9   :  { %410 = vst [vmem:[%s754_s3 + $0x8] sm:$0xff] %v408_v39 }

// kernel: mnist_cnn_forward.5
= control target key start
LH: loop header
LB: loop body
LE: loop exit
PB: predicated region body
PF: predicated region fallthrough
CT: control target
= control target key end

     0   :  { %v273_v3 = vmov 0   ;;  %vm60_vm0 = vcmask 1043456   ;;  %vm56_vm1 = vcmask 326656   ;;  %s345_s0 = inlined_call_operand.vmem [shape: bf16[4,40,128], index: 0, kind: input, shape index: {}]   ;;  %s346_s2 = inlined_call_operand.vmem [shape: f32[3,8,1], index: 2, kind: input, shape index: {}]   ;;  %s347_s1 = inlined_call_operand.vmem [shape: bf16[8,40], index: 1, kind: input, shape index: {}]   ;;  %s348_s3 = inlined_call_operand.vmem [shape: bf16[8,128], index: 3, kind: output, shape index: {}]  }
   0x1   :  { %v40_v0 = vld [vmem:[%s345_s0 + $0x10] sm:$0xf]  ;;  %v224_v1 = vld [vmem:[%s345_s0 + $0x24] sm:$0xf]  ;;  %v238_v2 = vld [vmem:[%s345_s0 + $0x38] sm:$0xf]  ;;  %271 = vset.pattern.permute.xlu0 %v273_v3  ;;  %272 = vset.pattern.permute.xlu1 %v273_v3 }
   0x2   :  { %v50_v4 = vunpack.c.l.b16 %v40_v0  ;;  %v95_v5 = vunpack.c.l.b16 %v224_v1  ;;  %v136_v6 = vunpack.c.l.b16 %v238_v2  ;;  %v252_v7 = vld [vmem:[%s345_s0 + $0x4c] sm:$0xf]  ;;  %v16_v13 = vld [vmem:[%s346_s2] sm:$0xff]  ;;  %v210_v17 = vld [vmem:[%s346_s2 + $0x10] sm:$0xff] }
   0x3   :  { %v177_v8 = vunpack.c.l.b16 %v252_v7  ;;  %19 = vperm.xlu0 %271, %v16_v13   ;;  %v263_v19 = vld [vmem:[%s345_s0 + $0x8] sm:$0xff]  ;;  %v265_v20 = vld [vmem:[%s345_s0 + $0x1c] sm:$0xff]  ;;  %v267_v21 = vld [vmem:[%s345_s0 + $0x30] sm:$0xff]  ;;  %33 = vperm.xlu1 %272, %v210_v17  }
   0x4   :  { %v53_v9 = vpack.c.b16 %v50_v4, %v50_v4  ;;  %v98_v10 = vpack.c.b16 %v95_v5, %v95_v5  ;;  %v139_v11 = vpack.c.b16 %v136_v6, %v136_v6  ;;  %v269_v22 = vld [vmem:[%s345_s0 + $0x44] sm:$0xff]  ;;  %v264_v24 = vld [vmem:[%s345_s0 + $0x14] sm:$0xff]  ;;  %v268_v27 = vld [vmem:[%s345_s0 + $0x3c] sm:$0xff] }
   0x5   :  { %v180_v12 = vpack.c.b16 %v177_v8, %v177_v8  ;;  %v262_v23 = vld [vmem:[%s345_s0] sm:$0xff]  ;;  %v209_v25 = vld [vmem:[%s346_s2 + $0x8] sm:$0xff] }
   0x6   :  { %v62_v14 = vsel %vm60_vm0, %v53_v9, 0  ;;  %v102_v15 = vsel %vm60_vm0, %v98_v10, 0  ;;  %v143_v16 = vsel %vm60_vm0, %v139_v11, 0  ;;  %v266_v26 = vld [vmem:[%s345_s0 + $0x28] sm:$0xff]  ;;  %v15_v28 = vld [vmem:[%s347_s1] sm:$0xf] }
   0x7   :  { %69 = vmatpush.bf16.msra.mxu0 %v62_v14  ;;  %109 = vmatpush.bf16.msra.mxu1 %v102_v15  ;;  %v184_v18 = vsel %vm60_vm0, %v180_v12, 0 }
   0x8   :  { %150 = vmatpush.bf16.msra.mxu2 %v143_v16  ;;  %191 = vmatpush.bf16.msra.mxu3 %v184_v18 }
   0xb   :  { %70 = vmatpush.bf16.msra.mxu0 %v263_v19  ;;  %110 = vmatpush.bf16.msra.mxu1 %v265_v20 }
   0xc   :  { %151 = vmatpush.bf16.msra.mxu2 %v267_v21  ;;  %192 = vmatpush.bf16.msra.mxu3 %v269_v22 }
   0xd   :  { %26 = vperm.xlu0 %271, %v209_v25  }
   0xf   :  { %71 = vmatpush.bf16.msra.mxu0 %v262_v23  ;;  %111 = vmatpush.bf16.msra.mxu1 %v264_v24 }
  0x10   :  { %152 = vmatpush.bf16.msra.mxu2 %v266_v26  ;;  %193 = vmatpush.bf16.msra.mxu3 %v268_v27 }
  0x12   :  { %219 = vmatmul.msk.bf16.vlgmr.msra.gmra.mxu0 %vm56_vm1, %v15_v28  ;;  %233 = vmatmul.msk.bf16.vlgmr.msra.gmra.mxu1 %vm56_vm1, %v15_v28 }
  0x13   :  { %247 = vmatmul.msk.bf16.vlgmr.msra.gmra.mxu2 %vm56_vm1, %v15_v28  ;;  %261 = vmatmul.msk.bf16.vlgmr.msra.gmra.mxu3 %vm56_vm1, %v15_v28 }
  0x75   :  { %v20_v29 = vpop.permute.xlu0 %19  ;;  %v34_v39 = vpop.permute.xlu1 %33 }
  0x7f   :  { %v27_v36 = vpop.permute.xlu0 %26 }
  0x8f   :  { %v73_v30 = vpop.f32.mrf.mxu0  ;;  %v113_v31 = vpop.f32.mrf.mxu1 }
  0x90   :  { %v74_v32 = vadd.f32 %v73_v30, %v20_v29  ;;  %v114_v33 = vadd.f32 %v113_v31, %v20_v29 }
  0x92   :  { %v77_v34 = vmax.f32 %v74_v32, 0.0  ;;  %v117_v35 = vmax.f32 %v114_v33, 0.0 }
  0x94   :  { %v78_v37 = vmul.f32 %v77_v34, %v27_v36  ;;  %v118_v38 = vmul.f32 %v117_v35, %v27_v36 }
  0x96   :  { %v154_v40 = vpop.f32.mrf.mxu2  ;;  %v195_v41 = vpop.f32.mrf.mxu3  ;;  %v79_v46 = vadd.f32 %v78_v37, %v34_v39  ;;  %v119_v47 = vadd.f32 %v118_v38, %v34_v39 }
  0x97   :  { %v155_v42 = vadd.f32 %v154_v40, %v20_v29  ;;  %v196_v43 = vadd.f32 %v195_v41, %v20_v29  ;;  %v75_v44 = vpop.f32.mrf.mxu0  ;;  %v115_v45 = vpop.f32.mrf.mxu1 }
  0x98   :  { %v120_v52 = vmax.f32 %v79_v46, %v119_v47 }
  0x99   :  { %v158_v48 = vmax.f32 %v155_v42, 0.0  ;;  %v199_v49 = vmax.f32 %v196_v43, 0.0 }
  0x9b   :  { %v159_v50 = vmul.f32 %v158_v48, %v27_v36  ;;  %v200_v51 = vmul.f32 %v199_v49, %v27_v36 }
  0x9d   :  { %v160_v53 = vadd.f32 %v159_v50, %v34_v39  ;;  %v201_v57 = vadd.f32 %v200_v51, %v34_v39 }
  0x9e   :  { %v156_v54 = vpop.f32.mrf.mxu2  ;;  %v197_v55 = vpop.f32.mrf.mxu3 }
  0x9f   :  { %v161_v56 = vmax.f32 %v120_v52, %v160_v53 }
  0xa1   :  { %v202_v58 = vmax.f32 %v161_v56, %v201_v57 }
  0xa3   :  { %v203_v59 = vpack.c.bf16 %v202_v58, %v202_v58 }
  0xa5   :  { %204 = vst [vmem:[%s348_s3] sm:$0xf] %v203_v59 }

// kernel: mnist_cnn_forward.6
= control target key start
LH: loop header
LB: loop body
LE: loop exit
PB: predicated region body
PF: predicated region fallthrough
CT: control target
= control target key end

     0   :  { %v447_v3 = vmov 0   ;;  %vm100_vm0 = vcmask 1043456   ;;  %vm96_vm1 = vcmask 588800   ;;  %s552_s0 = inlined_call_operand.vmem [shape: bf16[4,72,128], index: 0, kind: input, shape index: {}]   ;;  %s553_s2 = inlined_call_operand.vmem [shape: f32[3,16,1], index: 2, kind: input, shape index: {}]   ;;  %s554_s1 = inlined_call_operand.vmem [shape: bf16[16,72], index: 1, kind: input, shape index: {}]   ;;  %s555_s3 = inlined_call_operand.vmem [shape: bf16[16,128], index: 3, kind: output, shape index: {}]  }
   0x1   :  { %v63_v0 = vld [vmem:[%s552_s0 + $0x20] sm:$0xf]  ;;  %v351_v1 = vld [vmem:[%s552_s0 + $0x44] sm:$0xf]  ;;  %v377_v2 = vld [vmem:[%s552_s0 + $0x68] sm:$0xf]  ;;  %444 = vset.pattern.permute.xlu0 %v447_v3  ;;  %445 = vset.pattern.permute.xlu1 %v447_v3 }
   0x2   :  { %v86_v4 = vunpack.c.l.b16 %v63_v0  ;;  %v151_v5 = vunpack.c.l.b16 %v351_v1  ;;  %v213_v6 = vunpack.c.l.b16 %v377_v2  ;;  %v403_v7 = vld [vmem:[%s552_s0 + $0x8c] sm:$0xf]  ;;  %446 = vset.pattern.permute.xlu2 %v447_v3  ;;  %v425_v17 = vld [vmem:[%s552_s0 + $0x18] sm:$0xff]  ;;  %v433_v19 = vld [vmem:[%s552_s0 + $0x60] sm:$0xff] }
   0x3   :  { %v275_v8 = vunpack.c.l.b16 %v403_v7  ;;  %v429_v18 = vld [vmem:[%s552_s0 + $0x3c] sm:$0xff]  ;;  %v437_v20 = vld [vmem:[%s552_s0 + $0x84] sm:$0xff]  ;;  %v318_v22 = vld [vmem:[%s553_s2 + $0x10] sm:$0xff] }
   0x4   :  { %v91_v9 = vpack.c.b16 %v86_v4, %v86_v4  ;;  %v156_v10 = vpack.c.b16 %v151_v5, %v151_v5  ;;  %v218_v11 = vpack.c.b16 %v213_v6, %v213_v6  ;;  %v17_v21 = vld [vmem:[%s553_s2] sm:$0xff]  ;;  %34 = vperm.xlu1 %445, %v318_v22   ;;  %v424_v24 = vld [vmem:[%s552_s0 + $0x10] sm:$0xff]  ;;  %v432_v26 = vld [vmem:[%s552_s0 + $0x58] sm:$0xff] }
   0x5   :  { %v280_v12 = vpack.c.b16 %v275_v8, %v275_v8  ;;  %21 = vperm.xlu0 %444, %v17_v21   ;;  %v320_v23 = vld [vmem:[%s553_s2 + $0x20] sm:$0xff]  ;;  %v428_v25 = vld [vmem:[%s552_s0 + $0x34] sm:$0xff]  ;;  %v18_v28 = vld [vmem:[%s553_s2 + $0x8] sm:$0xff] }
   0x6   :  { %v102_v13 = vsel %vm100_vm0, %v91_v9, 0  ;;  %v162_v14 = vsel %vm100_vm0, %v156_v10, 0  ;;  %v224_v15 = vsel %vm100_vm0, %v218_v11, 0  ;;  %47 = vperm.xlu2 %446, %v320_v23   ;;  %v436_v27 = vld [vmem:[%s552_s0 + $0x7c] sm:$0xff]  ;;  %v423_v30 = vld [vmem:[%s552_s0 + $0x8] sm:$0xff]  ;;  %v431_v33 = vld [vmem:[%s552_s0 + $0x50] sm:$0xff] }
   0x7   :  { %107 = vmatpush.bf16.msra.mxu0 %v102_v13  ;;  %167 = vmatpush.bf16.msra.mxu1 %v162_v14  ;;  %v286_v16 = vsel %vm100_vm0, %v280_v12, 0  ;;  %v319_v29 = vld [vmem:[%s553_s2 + $0x18] sm:$0xff]  ;;  %v427_v31 = vld [vmem:[%s552_s0 + $0x2c] sm:$0xff]  ;;  %v422_v35 = vld [vmem:[%s552_s0] sm:$0xff] }
   0x8   :  { %229 = vmatpush.bf16.msra.mxu2 %v224_v15  ;;  %291 = vmatpush.bf16.msra.mxu3 %v286_v16  ;;  %v321_v32 = vld [vmem:[%s553_s2 + $0x28] sm:$0xff]  ;;  %v435_v34 = vld [vmem:[%s552_s0 + $0x74] sm:$0xff]  ;;  %v421_v39 = vld [vmem:[%s554_s1] sm:$0xff] }
   0x9   :  { %v426_v36 = vld [vmem:[%s552_s0 + $0x24] sm:$0xff]  ;;  %v434_v38 = vld [vmem:[%s552_s0 + $0x6c] sm:$0xff] }
   0xa   :  { %v430_v37 = vld [vmem:[%s552_s0 + $0x48] sm:$0xff] }
   0xb   :  { %108 = vmatpush.bf16.msra.mxu0 %v425_v17  ;;  %168 = vmatpush.bf16.msra.mxu1 %v429_v18 }
   0xc   :  { %230 = vmatpush.bf16.msra.mxu2 %v433_v19  ;;  %292 = vmatpush.bf16.msra.mxu3 %v437_v20 }
   0xd   :  { %26 = vperm.xlu0 %444, %v18_v28   ;;  %39 = vperm.xlu1 %445, %v319_v29  }
   0xe   :  { %52 = vperm.xlu2 %446, %v321_v32  }
   0xf   :  { %109 = vmatpush.bf16.msra.mxu0 %v424_v24  ;;  %169 = vmatpush.bf16.msra.mxu1 %v428_v25 }
  0x10   :  { %231 = vmatpush.bf16.msra.mxu2 %v432_v26  ;;  %293 = vmatpush.bf16.msra.mxu3 %v436_v27 }
  0x13   :  { %110 = vmatpush.bf16.msra.mxu0 %v423_v30  ;;  %170 = vmatpush.bf16.msra.mxu1 %v427_v31 }
  0x14   :  { %232 = vmatpush.bf16.msra.mxu2 %v431_v33  ;;  %294 = vmatpush.bf16.msra.mxu3 %v435_v34 }
  0x17   :  { %111 = vmatpush.bf16.msra.mxu0 %v422_v35  ;;  %171 = vmatpush.bf16.msra.mxu1 %v426_v36 }
  0x18   :  { %233 = vmatpush.bf16.msra.mxu2 %v430_v37  ;;  %295 = vmatpush.bf16.msra.mxu3 %v434_v38 }
  0x1a   :  { %342 = vmatmul.msk.bf16.vlgmr.msra.gmra.mxu0 %vm96_vm1, %v421_v39  ;;  %368 = vmatmul.msk.bf16.vlgmr.msra.gmra.mxu1 %vm96_vm1, %v421_v39 }
  0x1b   :  { %394 = vmatmul.msk.bf16.vlgmr.msra.gmra.mxu2 %vm96_vm1, %v421_v39  ;;  %420 = vmatmul.msk.bf16.vlgmr.msra.gmra.mxu3 %vm96_vm1, %v421_v39 }
  0x60   :  { %v48_v48 = vpop.permute.xlu2 %47 }
  0x68   :  { %v53_v12 = vpop.permute.xlu2 %52 }
  0x76   :  { %v35_v45 = vpop.permute.xlu1 %34 }
  0x77   :  { %v22_v40 = vpop.permute.xlu0 %21 }
  0x7f   :  { %v27_v49 = vpop.permute.xlu0 %26  ;;  %v40_v2 = vpop.permute.xlu1 %39 }
  0x97   :  { %v113_v41 = vpop.f32.mrf.mxu0  ;;  %v173_v42 = vpop.f32.mrf.mxu1 }
  0x98   :  { %v114_v43 = vadd.f32 %v113_v41, %v22_v40  ;;  %v174_v44 = vadd.f32 %v173_v42, %v22_v40 }
  0x9a   :  { %v118_v46 = vmax.f32 %v114_v43, 0.0  ;;  %v178_v47 = vmax.f32 %v174_v44, 0.0 }
  0x9c   :  { %v120_v55 = vmul.f32 %v118_v46, %v35_v45  ;;  %v180_v56 = vmul.f32 %v178_v47, %v35_v45 }
  0x9e   :  { %v235_v50 = vpop.f32.mrf.mxu2  ;;  %v297_v51 = vpop.f32.mrf.mxu3  ;;  %v122_v63 = vadd.f32 %v120_v55, %v48_v48  ;;  %v182_v0 = vadd.f32 %v180_v56, %v48_v48 }
  0x9f   :  { %v236_v52 = vadd.f32 %v235_v50, %v22_v40  ;;  %v115_v53 = vpop.f32.mrf.mxu0  ;;  %v175_v54 = vpop.f32.mrf.mxu1  ;;  %v298_v62 = vadd.f32 %v297_v51, %v22_v40 }
  0xa0   :  { %v116_v57 = vadd.f32 %v115_v53, %v27_v49  ;;  %v176_v58 = vadd.f32 %v175_v54, %v27_v49  ;;  %v184_v10 = vmax.f32 %v122_v63, %v182_v0 }
  0xa1   :  { %v240_v59 = vmax.f32 %v236_v52, 0.0  ;;  %v302_v7 = vmax.f32 %v298_v62, 0.0 }
  0xa2   :  { %v119_v60 = vmax.f32 %v116_v57, 0.0  ;;  %v179_v61 = vmax.f32 %v176_v58, 0.0 }
  0xa3   :  { %v242_v1 = vmul.f32 %v240_v59, %v35_v45  ;;  %v304_v17 = vmul.f32 %v302_v7, %v35_v45 }
  0xa4   :  { %v121_v3 = vmul.f32 %v119_v60, %v40_v2  ;;  %v181_v4 = vmul.f32 %v179_v61, %v40_v2 }
  0xa5   :  { %v244_v11 = vadd.f32 %v242_v1, %v48_v48  ;;  %v306_v23 = vadd.f32 %v304_v17, %v48_v48 }
  0xa6   :  { %v237_v5 = vpop.f32.mrf.mxu2  ;;  %v299_v6 = vpop.f32.mrf.mxu3  ;;  %v123_v13 = vadd.f32 %v121_v3, %v53_v12  ;;  %v183_v14 = vadd.f32 %v181_v4, %v53_v12 }
  0xa7   :  { %v238_v8 = vadd.f32 %v237_v5, %v27_v49  ;;  %v300_v9 = vadd.f32 %v299_v6, %v27_v49  ;;  %v246_v20 = vmax.f32 %v184_v10, %v244_v11 }
  0xa8   :  { %v185_v21 = vmax.f32 %v123_v13, %v183_v14 }
  0xa9   :  { %v241_v15 = vmax.f32 %v238_v8, 0.0  ;;  %v303_v16 = vmax.f32 %v300_v9, 0.0  ;;  %v308_v26 = vmax.f32 %v246_v20, %v306_v23 }
  0xab   :  { %v243_v18 = vmul.f32 %v241_v15, %v40_v2  ;;  %v305_v19 = vmul.f32 %v303_v16, %v40_v2 }
  0xad   :  { %v245_v22 = vadd.f32 %v243_v18, %v53_v12  ;;  %v307_v25 = vadd.f32 %v305_v19, %v53_v12 }
  0xaf   :  { %v247_v24 = vmax.f32 %v185_v21, %v245_v22 }
  0xb1   :  { %v309_v27 = vmax.f32 %v247_v24, %v307_v25 }
  0xb3   :  { %v441_v28 = vpack.c.bf16 %v309_v27, %v308_v26 }
  0xb5   :  { %442 = vst [vmem:[%s555_s3] sm:$0xff] %v441_v28  }

// kernel: mnist_cnn_forward.7
= control target key start
LH: loop header
LB: loop body
LE: loop exit
PB: predicated region body
PF: predicated region fallthrough
CT: control target
= control target key end

     0   :  { %vm110_vm0 = vcmask 130048   ;;  %vm222_vm1 = vcmask 1043456   ;;  %vm218_vm2 = vcmask 982016   ;;  %vm273_vm3 = vcmask 261120   ;;  %s524_s1 = inlined_call_operand.vmem [shape: bf16[144,120], index: 1, kind: input, shape index: {}]   ;;  %s525_s0 = inlined_call_operand.vmem [shape: bf16[8,144], index: 0, kind: input, shape index: {}]   ;;  %s526_s3 = inlined_call_operand.vmem [shape: bf16[120,32], index: 3, kind: input, shape index: {}]   ;;  %s527_s2 = inlined_call_operand.vmem [shape: f32[3,1,120], index: 2, kind: input, shape index: {}]   ;;  %s528_s4 = inlined_call_operand.vmem [shape: f32[3,1,32], index: 4, kind: input, shape index: {}]   ;;  %s529_s6 = inlined_call_operand.vmem [shape: f32[1,10], index: 6, kind: input, shape index: {}]   ;;  %s530_s5 = inlined_call_operand.vmem [shape: bf16[32,10], index: 5, kind: input, shape index: {}]   ;;  %s531_s7 = inlined_call_operand.vmem [shape: f32[8,10], index: 7, kind: output, shape index: {}]  }
   0x1   :  { %v382_v0 = vld [vmem:[%s524_s1 + $0x38] sm:$0xff]  ;;  %v381_v1 = vld [vmem:[%s524_s1 + $0x30] sm:$0xff]  ;;  %v383_v2 = vld [vmem:[%s524_s1 + $0x40] sm:$0xff]  ;;  %vm290_vm4 = vcmask 80896  }
   0x2   :  { %114 = vmatpush.bf16.msra.mxu0 %v382_v0  ;;  %v27_v3 = vld [vmem:[%s525_s0] sm:$0xff]  ;;  %v168_v5 = vld [vmem:[%s526_s3 + $0x38] sm:$0xf]  ;;  %134 = vmatpush.bf16.msra.mxu1 %v383_v2  ;;  %v380_v8 = vld [vmem:[%s524_s1 + $0x28] sm:$0xff] }
   0x3   :  { %v52_v4 = vunpack.c.h.b16 %v27_v3  ;;  %v202_v6 = vunpack.c.l.b16 %v168_v5  ;;  %v390_v11 = vld [vmem:[%s526_s3 + $0x30] sm:$0xff]  ;;  %v379_v12 = vld [vmem:[%s524_s1 + $0x20] sm:$0xff]  ;;  %v389_v13 = vld [vmem:[%s526_s3 + $0x28] sm:$0xff]  ;;  %v51_v17 = vunpack.c.l.b16 %v27_v3 }
   0x4   :  { %v378_v14 = vld [vmem:[%s524_s1 + $0x18] sm:$0xff]  ;;  %v377_v15 = vld [vmem:[%s524_s1 + $0x10] sm:$0xff]  ;;  %v376_v16 = vld [vmem:[%s524_s1 + $0x8] sm:$0xff] }
   0x5   :  { %v54_v7 = vpack.c.b16 %v52_v4, %v52_v4  ;;  %v210_v9 = vpack.c.b16 %v202_v6, %v202_v6  ;;  %v375_v18 = vld [vmem:[%s524_s1] sm:$0xff]  ;;  %v53_v19 = vpack.c.b16 %v51_v17, %v51_v17  ;;  %v387_v21 = vld [vmem:[%s526_s3 + $0x18] sm:$0xff]  ;;  %v386_v22 = vld [vmem:[%s526_s3 + $0x10] sm:$0xff] }
   0x6   :  { %115 = vmatpush.bf16.msra.mxu0 %v381_v1  ;;  %v388_v20 = vld [vmem:[%s526_s3 + $0x20] sm:$0xff]  ;;  %v385_v23 = vld [vmem:[%s526_s3 + $0x8] sm:$0xff] }
   0x7   :  { %332 = vmatmul.msk.bf16.vlgmr.msra.gmra.mxu1 %vm110_vm0, %v54_v7  ;;  %v224_v10 = vsel %vm222_vm1, %v210_v9, 0  ;;  %v384_v25 = vld [vmem:[%s526_s3] sm:$0xff]  ;;  %v392_v38 = vld [vmem:[%s530_s5 + $0x8] sm:$0xff] }
   0x8   :  { %226 = vmatpush.bf16.msra.mxu2 %v224_v10  ;;  %v393_v27 = vld [vmem:[%s527_s2] ss:$0 sm:$0xff]  ;;  %v394_v31 = vld [vmem:[%s527_s2 + $0x1] ss:$0 sm:$0xff]  ;;  %v395_v33 = vld [vmem:[%s527_s2 + $0x2] ss:$0 sm:$0xff]  ;;  %283 = vmatpush.bf16.msra.mxu3 %v392_v38 }
   0x9   :  { %v391_v39 = vld [vmem:[%s530_s5] sm:$0xff] }
   0xa   :  { %116 = vmatpush.bf16.msra.mxu0 %v380_v8  ;;  %v396_v40 = vld [vmem:[%s528_s4] ss:$0 sm:$0xff]  ;;  %v397_v43 = vld [vmem:[%s528_s4 + $0x1] ss:$0 sm:$0xff]  ;;  %v398_v45 = vld [vmem:[%s528_s4 + $0x2] ss:$0 sm:$0xff] }
   0xb   :  { %v399_v50 = vld [vmem:[%s529_s6] ss:$0 sm:$0xff] }
   0xc   :  { %227 = vmatpush.bf16.msra.mxu2 %v390_v11  ;;  %284 = vmatpush.bf16.msra.mxu3 %v391_v39 }
   0xe   :  { %117 = vmatpush.bf16.msra.mxu0 %v379_v12 }
  0x10   :  { %228 = vmatpush.bf16.msra.mxu2 %v389_v13 }
  0x12   :  { %118 = vmatpush.bf16.msra.mxu0 %v378_v14 }
  0x14   :  { %229 = vmatpush.bf16.msra.mxu2 %v388_v20 }
  0x16   :  { %119 = vmatpush.bf16.msra.mxu0 %v377_v15 }
  0x18   :  { %230 = vmatpush.bf16.msra.mxu2 %v387_v21 }
  0x1a   :  { %120 = vmatpush.bf16.msra.mxu0 %v376_v16 }
  0x1c   :  { %231 = vmatpush.bf16.msra.mxu2 %v386_v22 }
  0x1e   :  { %121 = vmatpush.bf16.msra.mxu0 %v375_v18 }
  0x20   :  { %232 = vmatpush.bf16.msra.mxu2 %v385_v23 }
  0x21   :  { %122 = vmatmul.bf16.vlgmr.msra.gmra.mxu0 %v53_v19 }
  0x24   :  { %233 = vmatpush.bf16.msra.mxu2 %v384_v25 }
  0x84   :  { %v136_v24 = vpop.f32.mrf.mxu1 }
  0x8c   :  { %v138_v26 = vpop.f32.mrf.mxu1 }
  0x9e   :  { %v123_v28 = vpop.f32.mrf.mxu0 }
  0x9f   :  { %v124_v29 = vadd.f32 %v393_v27, %v123_v28 }
  0xa1   :  { %v137_v30 = vadd.f32 %v136_v24, %v124_v29 }
  0xa3   :  { %v140_v32 = vmax.f32 %v137_v30, 0.0 }
  0xa5   :  { %v146_v34 = vmul.f32 %v394_v31, %v140_v32 }
  0xa6   :  { %v125_v35 = vpop.f32.mrf.mxu0 }
  0xa7   :  { %v152_v36 = vadd.f32 %v395_v33, %v146_v34 }
  0xa9   :  { %v153_v37 = vpack.c.bf16 %v152_v36, %v152_v36 }
  0xab   :  { %363 = vmatmul.msk.bf16.vlgmr.msra.gmra.mxu2 %vm218_vm2, %v153_v37 }
 0x12e   :  { %v235_v41 = vpop.f32.mrf.mxu2 }
 0x12f   :  { %v236_v42 = vadd.f32 %v396_v40, %v235_v41 }
 0x131   :  { %v239_v44 = vmax.f32 %v236_v42, 0.0 }
 0x133   :  { %v245_v46 = vmul.f32 %v397_v43, %v239_v44 }
 0x135   :  { %v251_v47 = vadd.f32 %v398_v45, %v245_v46 }
 0x136   :  { %v237_v48 = vpop.f32.mrf.mxu2 }
 0x137   :  { %v252_v49 = vpack.c.bf16 %v251_v47, %v251_v47 }
 0x139   :  { %374 = vmatmul.msk.bf16.vlgmr.msra.gmra.mxu3 %vm273_vm3, %v252_v49 }
 0x1bc   :  { %v286_v51 = vpop.f32.mrf.mxu3 }
 0x1bd   :  { %v287_v52 = vadd.f32 %v399_v50, %v286_v51 }
 0x1bf   :  { %291 = vst.msk [vmem:[%s531_s7] sm:$0xff] %vm290_vm4, %v287_v52 }
 0x1c4   :  { %v288_v53 = vpop.f32.mrf.mxu3 }

</bundles_post_ra>
